<compile_context>
chip_gen: v6e
topology: v6e:2x2x1
jax: 0.10.0
libtpu: 0.0.40
codegen_flags: <defaults>
</compile_context>

<pallas_src>
import functools

import jax
import jax.numpy as jnp
from jax.experimental import pallas as pl
from jax.experimental.pallas import tpu as pltpu

LANE = 128


def _round_up(n, m):
    return ((n + m - 1) // m) * m


def _pad2d(a, rows, cols):
    r, c = a.shape
    if r == rows and c == cols:
        return a
    return jnp.zeros((rows, cols), a.dtype).at[:r, :c].set(a)


# ----------------------------------- kernel -----------------------------------

def _vae_kernel(*refs, n_enc, n_dec, latent, latent_pad, compute_dtype):
    """Fused VAE forward on one batch tile.

    ref order:
      inputs : x [tile_b, in_dim], eps [tile_b, latent],
               (We_i, be_i) * n_enc,
               W_heads [hidden_pad, 2*latent_pad], b_heads,   # [means | log_var]
               (Wd_i, bd_i) * n_dec
      outputs: recon [tile_b, recon_dim], means / log_var / z [tile_b, latent]
    Weights are pre-padded & pre-cast to `compute_dtype`; biases are f32.
    """
    idx = 0
    x_ref = refs[idx]; idx += 1
    eps_ref = refs[idx]; idx += 1
    enc = [(refs[idx + 2 * i], refs[idx + 2 * i + 1]) for i in range(n_enc)]
    idx += 2 * n_enc
    wh_ref, bh_ref = refs[idx], refs[idx + 1]; idx += 2
    dec = [(refs[idx + 2 * i], refs[idx + 2 * i + 1]) for i in range(n_dec)]
    idx += 2 * n_dec
    recon_ref, means_ref, logvar_ref, z_ref = refs[idx:idx + 4]

    cd = compute_dtype

    # ---- Encoder MLP: Linear + ReLU chain (MXU matmuls, f32 accumulation) ----
    h = x_ref[...]                                   # f32 activations throughout
    for w_ref, b_ref in enc:
        acc = jnp.dot(h.astype(cd), w_ref[...], preferred_element_type=jnp.float32)
        h = jnp.maximum(acc + b_ref[...], 0.0)       # bias add + ReLU in f32

    # ---- Fused latent heads: one [hidden_pad, 2*latent_pad] matmul ----------
    heads = jnp.dot(h.astype(cd), wh_ref[...], preferred_element_type=jnp.float32)
    heads = heads + bh_ref[...]
    means = heads[:, :latent]                        # narrow (real-width) slices
    log_var = heads[:, latent_pad:latent_pad + latent]

    # ---- Reparameterization (f32): z = eps * exp(0.5*log_var) + means -------
    z = eps_ref[...] * jnp.exp(0.5 * log_var) + means

    # ---- Decoder MLP: Linear + ReLU ... Linear + Tanh ------------------------
    d = z
    for i, (w_ref, b_ref) in enumerate(dec):
        acc = jnp.dot(d.astype(cd), w_ref[...], preferred_element_type=jnp.float32)
        acc = acc + b_ref[...]
        d = jnp.maximum(acc, 0.0) if i + 1 < n_dec else jnp.tanh(acc)

    # ---- Direct stores, no concat temp; outputs carry only real features ----
    recon_ref[...] = d.astype(recon_ref.dtype)
    means_ref[...] = means.astype(means_ref.dtype)
    logvar_ref[...] = log_var.astype(logvar_ref.dtype)
    z_ref[...] = z.astype(z_ref.dtype)


# ------------------------------ param preparation ------------------------------

def prepare_vae_params(params, compute_dtype=jnp.float32):
    """Pad + (optionally bf16-)cast weights ONCE, outside the per-call path.

    Layout:
      * first encoder weight keeps an unpadded K (= in_dim)  -> x passed unpadded
      * first decoder weight keeps an unpadded K (= latent)  -> z kept narrow
      * last decoder weight keeps an unpadded N (= recon dim) -> recon unpadded
      * every other K/N padded to a multiple of 128 (zero-filled).
      * means/log_var heads fused into one [hidden_pad, 2*latent_pad] weight.
    Weights are cast to `compute_dtype`; biases stay f32 (f32 bias add / VPU).
    """
    enc_ws, enc_bs, wm, bm, wv, bv, dec_ws, dec_bs = params
    n_enc, n_dec = len(enc_ws), len(dec_ws)
    in_dim = enc_ws[0].shape[0] if n_enc else wm.shape[0]
    latent = wm.shape[1]

    enc_dims = [in_dim] + [w.shape[1] for w in enc_ws]
    dec_dims = [latent] + [w.shape[1] for w in dec_ws]
    latent_pad = _round_up(latent, LANE)
    hidden_k = enc_dims[-1] if n_enc == 0 else _round_up(enc_dims[-1], LANE)
    cd = compute_dtype

    enc_p = []
    for i, (w, b) in enumerate(zip(enc_ws, enc_bs)):
        k = enc_dims[i] if i == 0 else _round_up(enc_dims[i], LANE)
        n = _round_up(enc_dims[i + 1], LANE)
        enc_p.append((_pad2d(w, k, n).astype(cd),
                      _pad2d(b.reshape(1, -1), 1, n).astype(jnp.float32)))

    w_heads = jnp.concatenate([_pad2d(wm, hidden_k, latent_pad),
                               _pad2d(wv, hidden_k, latent_pad)], axis=1).astype(cd)
    b_heads = jnp.concatenate([_pad2d(bm.reshape(1, -1), 1, latent_pad),
                               _pad2d(bv.reshape(1, -1), 1, latent_pad)],
                              axis=1).astype(jnp.float32)

    dec_p = []
    for i, (w, b) in enumerate(zip(dec_ws, dec_bs)):
        k = dec_dims[i] if i == 0 else _round_up(dec_dims[i], LANE)
        n = dec_dims[i + 1] if i == n_dec - 1 else _round_up(dec_dims[i + 1], LANE)
        dec_p.append((_pad2d(w, k, n).astype(cd),
                      _pad2d(b.reshape(1, -1), 1, n).astype(jnp.float32)))

    return (tuple(enc_p), (w_heads, b_heads), tuple(dec_p))


# --------------------------------- forward call ---------------------------------

def vae_forward_pallas(x, eps, prepared_params, *, tile_b=512):
    """Fused VAE forward. `prepared_params` comes from prepare_vae_params().

    Returns (recon_x, means, log_var, z), matching VAE.forward in PyTorch
    (eps plays the role of torch.randn drawn inside forward()).
    """
    enc_p, (w_heads, b_heads), dec_p = prepared_params
    n_enc, n_dec = len(enc_p), len(dec_p)

    batch, in_dim = x.shape
    latent = eps.shape[1]
    latent_pad = w_heads.shape[1] // 2
    recon_dim = dec_p[-1][0].shape[1]
    cd = w_heads.dtype                      # compute dtype = pre-cast weight dtype

    flat_params = ([a for wb in enc_p for a in wb] + [w_heads, b_heads]
                   + [a for wb in dec_p for a in wb])

    # ---- batch tiling: biggest tile that fits the batch and the VMEM budget ----
    tile_b = max(8, min(int(tile_b), _round_up(batch, 8)))
    tile_b = _round_up(tile_b, 8)

    w_bytes = sum(int(a.size) * a.dtype.itemsize for a in flat_params)
    feat_widths = [int(w.shape[1]) for w in flat_params[::2]] + [in_dim, latent]
    max_feat = max(feat_widths)
    io_row_bytes = 4 * (in_dim + latent + recon_dim + 3 * latent)

    def need_bytes(tb):
        # 2x: Pallas double-buffers every BlockSpec input/output by default.
        return 2 * w_bytes + 2 * tb * io_row_bytes + 4 * tb * 6 * max_feat

    VMEM_BUDGET = 40 << 20        # conservative: leaves headroom in v7x's 64 MiB
    while tile_b > 8 and need_bytes(tile_b) > VMEM_BUDGET:
        tile_b = max(8, _round_up(tile_b // 2, 8))

    b_pad = _round_up(batch, tile_b)
    if b_pad != batch:            # only pads the ragged tail tile's rows
        x = jnp.zeros((b_pad, in_dim), x.dtype).at[:batch].set(x)
        eps = jnp.zeros((b_pad, latent), eps.dtype).at[:batch].set(eps)

    grid = (b_pad // tile_b,)

    def row_spec(feat):
        return pl.BlockSpec((tile_b, feat), lambda i: (i, 0))

    def const_spec(arr):          # full-array block, DMA'd once (index constant)
        return pl.BlockSpec(arr.shape, lambda i: (0, 0))

    inputs = [x, eps] + flat_params
    in_specs = [row_spec(in_dim), row_spec(latent)] + [const_spec(a) for a in flat_params]
    out_specs = (row_spec(recon_dim), row_spec(latent), row_spec(latent), row_spec(latent))
    out_shape = tuple(jax.ShapeDtypeStruct((b_pad, d), jnp.float32)
                      for d in (recon_dim, latent, latent, latent))

    vmem_limit = int(min(48 << 20, max(need_bytes(tile_b) + (4 << 20), 16 << 20)))

    cost = pl.CostEstimate(
        flops=2 * b_pad * sum(int(w.shape[0]) * int(w.shape[1])
                              for w in flat_params[::2]),
        transcendentals=b_pad * (latent + recon_dim),
        bytes_accessed=w_bytes + b_pad * io_row_bytes)

    kernel = functools.partial(_vae_kernel, n_enc=n_enc, n_dec=n_dec,
                               latent=latent, latent_pad=latent_pad,
                               compute_dtype=cd)

    recon, means, log_var, z = pl.pallas_call(
        kernel,
        out_shape=out_shape,
        grid=grid,
        in_specs=in_specs,
        out_specs=out_specs,
        compiler_params=pltpu.CompilerParams(
            dimension_semantics=("parallel",),   # megacore-shard the batch tiles
            vmem_limit_bytes=vmem_limit),
        cost_estimate=cost,
    )(*inputs)

    if b_pad != batch:
        recon, means, log_var, z = (a[:batch] for a in (recon, means, log_var, z))
    return recon, means, log_var, z


# ----------------------------- parameters & reference -----------------------------

def _init_linear(key, in_size, out_size):
    """PyTorch-style nn.Linear init (uniform +-1/sqrt(in)); W stored [in, out]."""
    kw, kb = jax.random.split(key)
    bound = 1.0 / jnp.sqrt(jnp.float32(in_size))
    w = jax.random.uniform(kw, (in_size, out_size), jnp.float32, -bound, bound)
    b = jax.random.uniform(kb, (1, out_size), jnp.float32, -bound, bound)
    return w, b


def make_vae_params(key, encoder_layer_sizes, latent_size, decoder_layer_sizes):
    """Non-conditional VAE (conditional=False, num_labels=0)."""
    keys = jax.random.split(key, 16)
    ki = iter(keys)

    enc_ws, enc_bs = [], []
    for in_s, out_s in zip(encoder_layer_sizes[:-1], encoder_layer_sizes[1:]):
        w, b = _init_linear(next(ki), in_s, out_s)
        enc_ws.append(w); enc_bs.append(b)
    wm, bm = _init_linear(next(ki), encoder_layer_sizes[-1], latent_size)
    wv, bv = _init_linear(next(ki), encoder_layer_sizes[-1], latent_size)

    dec_ws, dec_bs = [], []
    dec_in = [latent_size] + decoder_layer_sizes[:-1]
    for in_s, out_s in zip(dec_in, decoder_layer_sizes):
        w, b = _init_linear(next(ki), in_s, out_s)
        dec_ws.append(w); dec_bs.append(b)

    return (enc_ws, enc_bs, wm, bm, wv, bv, dec_ws, dec_bs)


def vae_forward_ref(x, eps, params):
    """Pure-JAX reference of the same forward pass (correctness check)."""
    enc_ws, enc_bs, wm, bm, wv, bv, dec_ws, dec_bs = params
    h = x
    for w, b in zip(enc_ws, enc_bs):
        h = jnp.maximum(h @ w + b, 0.0)
    means = h @ wm + bm
    log_var = h @ wv + bv
    z = eps * jnp.exp(0.5 * log_var) + means
    d = z
    n_dec = len(dec_ws)
    for i, (w, b) in enumerate(zip(dec_ws, dec_bs)):
        d = d @ w + b
        d = jnp.maximum(d, 0.0) if i + 1 < n_dec else jnp.tanh(d)
    return d, means, log_var, z


if __name__ == "__main__":
    # Config: VAE(encoder_layer_sizes=[32, 64], latent_size=16,
    #             decoder_layer_sizes=[64, 32], conditional=False)
    encoder_layer_sizes = [32, 64]
    latent_size = 16
    decoder_layer_sizes = [64, 32]
    batch = 256          # fits in one 256-row batch tile (single grid step)

    root = jax.random.PRNGKey(0)
    k_params, k_x, k_eps = jax.random.split(root, 3)

    params = make_vae_params(k_params, encoder_layer_sizes, latent_size,
                             decoder_layer_sizes)
    x = jax.random.normal(k_x, (batch, encoder_layer_sizes[0]), jnp.float32)
    # TODO(synk): torch.randn inside forward() has no in-kernel equivalent here;
    # eps is drawn deterministically outside and fed to the kernel.
    eps = jax.random.normal(k_eps, (batch, latent_size), jnp.float32)

    # One-time weight padding / casting, outside the per-call jit path.
    prepared_f32 = prepare_vae_params(params, compute_dtype=jnp.float32)
    prepared_bf16 = prepare_vae_params(params, compute_dtype=jnp.bfloat16)

    fwd = jax.jit(functools.partial(vae_forward_pallas, tile_b=512))

    # ---- f32 path ----
    recon_x, means, log_var, z = fwd(x, eps, prepared_f32)
    jax.block_until_ready((recon_x, means, log_var, z))

    r_recon, r_means, r_logvar, r_z = vae_forward_ref(x, eps, params)
    assert jnp.allclose(recon_x, r_recon, atol=1e-4, rtol=1e-4)
    assert jnp.allclose(means, r_means, atol=1e-4, rtol=1e-4)
    assert jnp.allclose(log_var, r_logvar, atol=1e-4, rtol=1e-4)
    assert jnp.allclose(z, r_z, atol=1e-4, rtol=1e-4)

    # ---- bf16-matmul path (pre-cast weights, f32 accumulation) ----
    b_recon, b_means, b_logvar, b_z = fwd(x, eps, prepared_bf16)
    jax.block_until_ready((b_recon, b_means, b_logvar, b_z))
    assert jnp.allclose(b_recon, r_recon, atol=5e-2, rtol=5e-2)
    assert jnp.allclose(b_means, r_means, atol=5e-2, rtol=5e-2)
    assert jnp.allclose(b_logvar, r_logvar, atol=5e-2, rtol=5e-2)
    assert jnp.allclose(b_z, r_z, atol=5e-2, rtol=5e-2)

    # ---- ragged-batch path (exercises row padding / trimming) ----
    xs, epss = x[:100], eps[:100]
    s_recon, s_means, s_logvar, s_z = fwd(xs, epss, prepared_f32)
    jax.block_until_ready((s_recon, s_means, s_logvar, s_z))
    assert jnp.allclose(s_recon, r_recon[:100], atol=1e-4, rtol=1e-4)
    assert jnp.allclose(s_means, r_means[:100], atol=1e-4, rtol=1e-4)
    assert jnp.allclose(s_logvar, r_logvar[:100], atol=1e-4, rtol=1e-4)
    assert jnp.allclose(s_z, r_z[:100], atol=1e-4, rtol=1e-4)

    print("KERNEL_OK")
</pallas_src>

<mosaic_0001>
module attributes {stable_mosaic.version = 11 : i64} {
  func.func @_vae_kernel(%arg0: i32, %arg1: memref<256x32xf32, #tpu.memory_space<vmem>>, %arg2: memref<256x16xf32, #tpu.memory_space<vmem>>, %arg3: memref<32x128xf32, #tpu.memory_space<vmem>>, %arg4: memref<1x128xf32, #tpu.memory_space<vmem>>, %arg5: memref<128x256xf32, #tpu.memory_space<vmem>>, %arg6: memref<1x256xf32, #tpu.memory_space<vmem>>, %arg7: memref<16x128xf32, #tpu.memory_space<vmem>>, %arg8: memref<1x128xf32, #tpu.memory_space<vmem>>, %arg9: memref<128x32xf32, #tpu.memory_space<vmem>>, %arg10: memref<1x32xf32, #tpu.memory_space<vmem>>, %arg11: memref<256x32xf32, #tpu.memory_space<vmem>>, %arg12: memref<256x16xf32, #tpu.memory_space<vmem>>, %arg13: memref<256x16xf32, #tpu.memory_space<vmem>>, %arg14: memref<256x16xf32, #tpu.memory_space<vmem>>) attributes {dimension_semantics = [#tpu.dimension_semantics<parallel>], iteration_bounds = array<i64: 1>, scalar_prefetch = 0 : i64, scratch_operands = 0 : i64, tpu.core_type = #tpu.core_type<tc>, window_params = [{transform_indices = @transform_0, window_bounds = array<i64: 256, 32>}, {transform_indices = @transform_1, window_bounds = array<i64: 256, 16>}, {pipeline_mode = #tpu.pipeline_mode<synchronous>, transform_indices = @transform_2, window_bounds = array<i64: 32, 128>}, {pipeline_mode = #tpu.pipeline_mode<synchronous>, transform_indices = @transform_3, window_bounds = array<i64: 1, 128>}, {pipeline_mode = #tpu.pipeline_mode<synchronous>, transform_indices = @transform_4, window_bounds = array<i64: 128, 256>}, {pipeline_mode = #tpu.pipeline_mode<synchronous>, transform_indices = @transform_5, window_bounds = array<i64: 1, 256>}, {pipeline_mode = #tpu.pipeline_mode<synchronous>, transform_indices = @transform_6, window_bounds = array<i64: 16, 128>}, {pipeline_mode = #tpu.pipeline_mode<synchronous>, transform_indices = @transform_7, window_bounds = array<i64: 1, 128>}, {pipeline_mode = #tpu.pipeline_mode<synchronous>, transform_indices = @transform_8, window_bounds = array<i64: 128, 32>}, {pipeline_mode = #tpu.pipeline_mode<synchronous>, transform_indices = @transform_9, window_bounds = array<i64: 1, 32>}, {transform_indices = @transform_10, window_bounds = array<i64: 256, 32>}, {transform_indices = @transform_11, window_bounds = array<i64: 256, 16>}, {transform_indices = @transform_12, window_bounds = array<i64: 256, 16>}, {transform_indices = @transform_13, window_bounds = array<i64: 256, 16>}]} {
    %c0 = arith.constant 0 : index
    %c0_0 = arith.constant 0 : index
    %0 = vector.load %arg1[%c0, %c0_0] : memref<256x32xf32, #tpu.memory_space<vmem>>, vector<256x32xf32>
    %c0_1 = arith.constant 0 : index
    %c0_2 = arith.constant 0 : index
    %1 = vector.load %arg3[%c0_1, %c0_2] : memref<32x128xf32, #tpu.memory_space<vmem>>, vector<32x128xf32>
    %cst = arith.constant dense<0.000000e+00> : vector<256x128xf32>
    %2 = tpu.matmul %0, %1, %cst {dimension_numbers = #tpu.dot_dimension_numbers<[1], [0], [0], [1], [0, 0, 1, 1], [], []>} : vector<256x32xf32>, vector<32x128xf32>, vector<256x128xf32> -> vector<256x128xf32>
    %c0_3 = arith.constant 0 : index
    %c0_4 = arith.constant 0 : index
    %3 = vector.load %arg4[%c0_3, %c0_4] : memref<1x128xf32, #tpu.memory_space<vmem>>, vector<1x128xf32>
    %4 = vector.broadcast %3 : vector<1x128xf32> to vector<256x128xf32>
    %5 = arith.addf %2, %4 : vector<256x128xf32>
    %cst_5 = arith.constant 0.000000e+00 : f32
    %6 = vector.broadcast %cst_5 : f32 to vector<256x128xf32>
    %7 = arith.maximumf %5, %6 : vector<256x128xf32>
    %c0_6 = arith.constant 0 : index
    %c0_7 = arith.constant 0 : index
    %8 = vector.load %arg5[%c0_6, %c0_7] : memref<128x256xf32, #tpu.memory_space<vmem>>, vector<128x256xf32>
    %cst_8 = arith.constant dense<0.000000e+00> : vector<256x256xf32>
    %9 = tpu.matmul %7, %8, %cst_8 {dimension_numbers = #tpu.dot_dimension_numbers<[1], [0], [0], [1], [0, 0, 1, 1], [], []>} : vector<256x128xf32>, vector<128x256xf32>, vector<256x256xf32> -> vector<256x256xf32>
    %c0_9 = arith.constant 0 : index
    %c0_10 = arith.constant 0 : index
    %10 = vector.load %arg6[%c0_9, %c0_10] : memref<1x256xf32, #tpu.memory_space<vmem>>, vector<1x256xf32>
    %11 = vector.broadcast %10 : vector<1x256xf32> to vector<256x256xf32>
    %12 = arith.addf %9, %11 : vector<256x256xf32>
    %13 = vector.extract_strided_slice %12 {offsets = [0, 0], sizes = [256, 16], strides = [1, 1]} : vector<256x256xf32> to vector<256x16xf32>
    %14 = vector.extract_strided_slice %12 {offsets = [0, 128], sizes = [256, 16], strides = [1, 1]} : vector<256x256xf32> to vector<256x16xf32>
    %c0_11 = arith.constant 0 : index
    %c0_12 = arith.constant 0 : index
    %15 = vector.load %arg2[%c0_11, %c0_12] : memref<256x16xf32, #tpu.memory_space<vmem>>, vector<256x16xf32>
    %cst_13 = arith.constant 5.000000e-01 : f32
    %16 = vector.broadcast %cst_13 : f32 to vector<256x16xf32>
    %17 = arith.mulf %16, %14 : vector<256x16xf32>
    %18 = math.exp %17 : vector<256x16xf32>
    %19 = arith.mulf %15, %18 : vector<256x16xf32>
    %20 = arith.addf %19, %13 : vector<256x16xf32>
    %c0_14 = arith.constant 0 : index
    %c0_15 = arith.constant 0 : index
    %21 = vector.load %arg7[%c0_14, %c0_15] : memref<16x128xf32, #tpu.memory_space<vmem>>, vector<16x128xf32>
    %cst_16 = arith.constant dense<0.000000e+00> : vector<256x128xf32>
    %22 = tpu.matmul %20, %21, %cst_16 {dimension_numbers = #tpu.dot_dimension_numbers<[1], [0], [0], [1], [0, 0, 1, 1], [], []>} : vector<256x16xf32>, vector<16x128xf32>, vector<256x128xf32> -> vector<256x128xf32>
    %c0_17 = arith.constant 0 : index
    %c0_18 = arith.constant 0 : index
    %23 = vector.load %arg8[%c0_17, %c0_18] : memref<1x128xf32, #tpu.memory_space<vmem>>, vector<1x128xf32>
    %24 = vector.broadcast %23 : vector<1x128xf32> to vector<256x128xf32>
    %25 = arith.addf %22, %24 : vector<256x128xf32>
    %cst_19 = arith.constant 0.000000e+00 : f32
    %26 = vector.broadcast %cst_19 : f32 to vector<256x128xf32>
    %27 = arith.maximumf %25, %26 : vector<256x128xf32>
    %c0_20 = arith.constant 0 : index
    %c0_21 = arith.constant 0 : index
    %28 = vector.load %arg9[%c0_20, %c0_21] : memref<128x32xf32, #tpu.memory_space<vmem>>, vector<128x32xf32>
    %cst_22 = arith.constant dense<0.000000e+00> : vector<256x32xf32>
    %29 = tpu.matmul %27, %28, %cst_22 {dimension_numbers = #tpu.dot_dimension_numbers<[1], [0], [0], [1], [0, 0, 1, 1], [], []>} : vector<256x128xf32>, vector<128x32xf32>, vector<256x32xf32> -> vector<256x32xf32>
    %c0_23 = arith.constant 0 : index
    %c0_24 = arith.constant 0 : index
    %30 = vector.load %arg10[%c0_23, %c0_24] : memref<1x32xf32, #tpu.memory_space<vmem>>, vector<1x32xf32>
    %31 = vector.broadcast %30 : vector<1x32xf32> to vector<256x32xf32>
    %32 = arith.addf %29, %31 : vector<256x32xf32>
    %33 = math.tanh %32 : vector<256x32xf32>
    %c0_25 = arith.constant 0 : index
    %c0_26 = arith.constant 0 : index
    %34 = vector.load %arg11[%c0_25, %c0_26] : memref<256x32xf32, #tpu.memory_space<vmem>>, vector<256x32xf32>
    tpu.vector_store %arg11[%c0_25, %c0_26], %33 {strides = array<i32>} : memref<256x32xf32, #tpu.memory_space<vmem>>, vector<256x32xf32>,
    %c0_27 = arith.constant 0 : index
    %c0_28 = arith.constant 0 : index
    %35 = vector.load %arg12[%c0_27, %c0_28] : memref<256x16xf32, #tpu.memory_space<vmem>>, vector<256x16xf32>
    tpu.vector_store %arg12[%c0_27, %c0_28], %13 {strides = array<i32>} : memref<256x16xf32, #tpu.memory_space<vmem>>, vector<256x16xf32>,
    %c0_29 = arith.constant 0 : index
    %c0_30 = arith.constant 0 : index
    %36 = vector.load %arg13[%c0_29, %c0_30] : memref<256x16xf32, #tpu.memory_space<vmem>>, vector<256x16xf32>
    tpu.vector_store %arg13[%c0_29, %c0_30], %14 {strides = array<i32>} : memref<256x16xf32, #tpu.memory_space<vmem>>, vector<256x16xf32>,
    %c0_31 = arith.constant 0 : index
    %c0_32 = arith.constant 0 : index
    %37 = vector.load %arg14[%c0_31, %c0_32] : memref<256x16xf32, #tpu.memory_space<vmem>>, vector<256x16xf32>
    tpu.vector_store %arg14[%c0_31, %c0_32], %20 {strides = array<i32>} : memref<256x16xf32, #tpu.memory_space<vmem>>, vector<256x16xf32>,
    return
  }
  func.func @transform_0(%arg0: i32) -> (i32, i32) {
    %c0_i32 = arith.constant 0 : i32
    %c0_i32_0 = arith.constant 0 : i32
    return %arg0, %c0_i32 : i32, i32
  }
  func.func @transform_1(%arg0: i32) -> (i32, i32) {
    %c0_i32 = arith.constant 0 : i32
    %c0_i32_0 = arith.constant 0 : i32
    return %arg0, %c0_i32 : i32, i32
  }
  func.func @transform_2(%arg0: i32) -> (i32, i32) {
    %c0_i32 = arith.constant 0 : i32
    %c0_i32_0 = arith.constant 0 : i32
    %c0_i32_1 = arith.constant 0 : i32
    return %c0_i32, %c0_i32_0 : i32, i32
  }
  func.func @transform_3(%arg0: i32) -> (i32, i32) {
    %c0_i32 = arith.constant 0 : i32
    %c0_i32_0 = arith.constant 0 : i32
    %c0_i32_1 = arith.constant 0 : i32
    return %c0_i32, %c0_i32_0 : i32, i32
  }
  func.func @transform_4(%arg0: i32) -> (i32, i32) {
    %c0_i32 = arith.constant 0 : i32
    %c0_i32_0 = arith.constant 0 : i32
    %c0_i32_1 = arith.constant 0 : i32
    return %c0_i32, %c0_i32_0 : i32, i32
  }
  func.func @transform_5(%arg0: i32) -> (i32, i32) {
    %c0_i32 = arith.constant 0 : i32
    %c0_i32_0 = arith.constant 0 : i32
    %c0_i32_1 = arith.constant 0 : i32
    return %c0_i32, %c0_i32_0 : i32, i32
  }
  func.func @transform_6(%arg0: i32) -> (i32, i32) {
    %c0_i32 = arith.constant 0 : i32
    %c0_i32_0 = arith.constant 0 : i32
    %c0_i32_1 = arith.constant 0 : i32
    return %c0_i32, %c0_i32_0 : i32, i32
  }
  func.func @transform_7(%arg0: i32) -> (i32, i32) {
    %c0_i32 = arith.constant 0 : i32
    %c0_i32_0 = arith.constant 0 : i32
    %c0_i32_1 = arith.constant 0 : i32
    return %c0_i32, %c0_i32_0 : i32, i32
  }
  func.func @transform_8(%arg0: i32) -> (i32, i32) {
    %c0_i32 = arith.constant 0 : i32
    %c0_i32_0 = arith.constant 0 : i32
    %c0_i32_1 = arith.constant 0 : i32
    return %c0_i32, %c0_i32_0 : i32, i32
  }
  func.func @transform_9(%arg0: i32) -> (i32, i32) {
    %c0_i32 = arith.constant 0 : i32
    %c0_i32_0 = arith.constant 0 : i32
    %c0_i32_1 = arith.constant 0 : i32
    return %c0_i32, %c0_i32_0 : i32, i32
  }
  func.func @transform_10(%arg0: i32) -> (i32, i32) {
    %c0_i32 = arith.constant 0 : i32
    %c0_i32_0 = arith.constant 0 : i32
    return %arg0, %c0_i32 : i32, i32
  }
  func.func @transform_11(%arg0: i32) -> (i32, i32) {
    %c0_i32 = arith.constant 0 : i32
    %c0_i32_0 = arith.constant 0 : i32
    return %arg0, %c0_i32 : i32, i32
  }
  func.func @transform_12(%arg0: i32) -> (i32, i32) {
    %c0_i32 = arith.constant 0 : i32
    %c0_i32_0 = arith.constant 0 : i32
    return %arg0, %c0_i32 : i32, i32
  }
  func.func @transform_13(%arg0: i32) -> (i32, i32) {
    %c0_i32 = arith.constant 0 : i32
    %c0_i32_0 = arith.constant 0 : i32
    return %arg0, %c0_i32 : i32, i32
  }
}

</mosaic_0001>

<bundles_post_ra>
// kernel: vae_forward_pallas.1
= control target key start
LH: loop header
LB: loop body
LE: loop exit
PB: predicated region body
PF: predicated region fallthrough
CT: control target
= control target key end

     0   :  { %vm82_vm0 = vcmask 261120   ;;  %vm938_vm1 = vcmask 130048   ;;  %s3557_s2 = inlined_call_operand.vmem [shape: f32[32,128], index: 2, kind: input, shape index: {}]   ;;  %s3558_s0 = inlined_call_operand.vmem [shape: f32[256,32], index: 0, kind: input, shape index: {}]   ;;  %s3559_s4 = inlined_call_operand.vmem [shape: f32[128,256], index: 4, kind: input, shape index: {}]   ;;  %s3560_s3 = inlined_call_operand.vmem [shape: f32[1,128], index: 3, kind: input, shape index: {}]   ;;  %s3561_s6 = inlined_call_operand.vmem [shape: f32[16,128], index: 6, kind: input, shape index: {}]   ;;  %s3562_s5 = inlined_call_operand.vmem [shape: f32[1,256], index: 5, kind: input, shape index: {}]   ;;  %s3563_s11 = inlined_call_operand.vmem [shape: f32[256,16], index: 11, kind: output, shape index: {1}]   ;;  %s3564_s12 = inlined_call_operand.vmem [shape: f32[256,16], index: 12, kind: output, shape index: {2}]   ;;  %s3565_s1 = inlined_call_operand.vmem [shape: f32[256,16], index: 1, kind: input, shape index: {}]   ;;  %s3566_s8 = inlined_call_operand.vmem [shape: f32[128,32], index: 8, kind: input, shape index: {}]   ;;  %s3567_s13 = inlined_call_operand.vmem [shape: f32[256,16], index: 13, kind: output, shape index: {3}]   ;;  %s3568_s7 = inlined_call_operand.vmem [shape: f32[1,128], index: 7, kind: input, shape index: {}]   ;;  %s3569_s9 = inlined_call_operand.vmem [shape: f32[1,32], index: 9, kind: input, shape index: {}]   ;;  %s3570_s10 = inlined_call_operand.vmem [shape: f32[256,32], index: 10, kind: output, shape index: {0}]  }
   0x1   :  { %v74_v0 = vld [vmem:[%s3557_s2 + $0x18] sm:$0xff]  ;;  %v73_v1 = vld [vmem:[%s3557_s2 + $0x10] sm:$0xff]  ;;  %v39_v2 = vld [vmem:[%s3558_s0] sm:$0xff] }
   0x2   :  { %1901 = vmatprep.subr.mxu0 %v74_v0  ;;  %2089 = vmatprep.subr.mxu1 %v74_v0  ;;  %v72_v3 = vld [vmem:[%s3557_s2 + $0x8] sm:$0xff]  ;;  %v71_v4 = vld [vmem:[%s3557_s2] sm:$0xff]  ;;  %v41_v6 = vld [vmem:[%s3558_s0 + $0x10] sm:$0xff] }
   0x3   :  { %1902 = vmatpush3.msra.mxu0 %v74_v0  ;;  %1909 = vmatprep.mubr.msk.f32.mxu0 %vm82_vm0, %v39_v2  ;;  %v40_v5 = vld [vmem:[%s3558_s0 + $0x8] sm:$0xff]  ;;  %v55_v7 = vld [vmem:[%s3558_s0 + $0x80] sm:$0xff]  ;;  %v57_v9 = vld [vmem:[%s3558_s0 + $0x90] sm:$0xff] }
   0x4   :  { %1903 = vmatprep.subr.mxu0 %v73_v1  ;;  %2093 = vmatpush3.msra.mxu1 %v74_v0  ;;  %v56_v8 = vld [vmem:[%s3558_s0 + $0x88] sm:$0xff]  ;;  %v42_v10 = vld [vmem:[%s3558_s0 + $0x18] sm:$0xff]  ;;  %v43_v11 = vld [vmem:[%s3558_s0 + $0x20] sm:$0xff] }
   0x5   :  { %1904 = vmatpush3.msra.mxu0 %v73_v1  ;;  %2090 = vmatprep.subr.mxu1 %v73_v1  ;;  %v58_v12 = vld [vmem:[%s3558_s0 + $0x98] sm:$0xff]  ;;  %v466_v14 = vld [vmem:[%s3559_s4 + $0xf0] sm:$0xff]  ;;  %v465_v15 = vld [vmem:[%s3559_s4 + $0xe8] sm:$0xff] }
   0x6   :  { %1905 = vmatprep.subr.mxu0 %v72_v3  ;;  %2094 = vmatpush3.msra.mxu1 %v73_v1  ;;  %v467_v13 = vld [vmem:[%s3559_s4 + $0xf8] sm:$0xff]  ;;  %v59_v16 = vld [vmem:[%s3558_s0 + $0xa0] sm:$0xff]  ;;  %v44_v18 = vld [vmem:[%s3558_s0 + $0x28] sm:$0xff] }
   0x7   :  { %1906 = vmatpush3.msra.mxu0 %v72_v3  ;;  %2091 = vmatprep.subr.mxu1 %v72_v3  ;;  %v464_v17 = vld [vmem:[%s3559_s4 + $0xe0] sm:$0xff]  ;;  %v463_v19 = vld [vmem:[%s3559_s4 + $0xd8] sm:$0xff]  ;;  %v45_v20 = vld [vmem:[%s3558_s0 + $0x30] sm:$0xff] }
   0x8   :  { %1907 = vmatprep.subr.mxu0 %v71_v4  ;;  %2095 = vmatpush3.msra.mxu1 %v72_v3  ;;  %v462_v21 = vld [vmem:[%s3559_s4 + $0xd0] sm:$0xff]  ;;  %v60_v22 = vld [vmem:[%s3558_s0 + $0xa8] sm:$0xff]  ;;  %v460_v25 = vld [vmem:[%s3559_s4 + $0xc0] sm:$0xff] }
   0x9   :  { %1908 = vmatpush3.msra.mxu0 %v71_v4  ;;  %2092 = vmatprep.subr.mxu1 %v71_v4  ;;  %v461_v23 = vld [vmem:[%s3559_s4 + $0xc8] sm:$0xff]  ;;  %v61_v24 = vld [vmem:[%s3558_s0 + $0xb0] sm:$0xff]  ;;  %v46_v26 = vld [vmem:[%s3558_s0 + $0x38] sm:$0xff] }
   0xa   :  { %1910 = vmatmul.mubr.msk.f32.vlgmr.msra.gmra.mxu0 %vm82_vm0, %v40_v5  ;;  %2096 = vmatpush3.msra.mxu1 %v71_v4  ;;  %v459_v27 = vld [vmem:[%s3559_s4 + $0xb8] sm:$0xff]  ;;  %v47_v28 = vld [vmem:[%s3558_s0 + $0x40] sm:$0xff]  ;;  %v458_v29 = vld [vmem:[%s3559_s4 + $0xb0] sm:$0xff]  ;;  %v2226_v4 = vmov 0.0  }
   0xb   :  { %1912 = vmatprep.mubr.msk.f32.mxu0 %vm82_vm0, %v41_v6  ;;  %1933 = vmatprep.mubr.msk.f32.mxu1 %vm82_vm0, %v55_v7  ;;  %v62_v30 = vld [vmem:[%s3558_s0 + $0xb8] sm:$0xff]  ;;  %v457_v31 = vld [vmem:[%s3559_s4 + $0xa8] sm:$0xff]  ;;  %v63_v32 = vld [vmem:[%s3558_s0 + $0xc0] sm:$0xff] }
   0xc   :  { %1934 = vmatmul.mubr.msk.f32.vlgmr.msra.gmra.mxu1 %vm82_vm0, %v56_v8  ;;  %480 = vmatprep.subr.mxu1 %v467_v13  ;;  %v456_v33 = vld [vmem:[%s3559_s4 + $0xa0] sm:$0xff]  ;;  %v48_v34 = vld [vmem:[%s3558_s0 + $0x48] sm:$0xff]  ;;  %v455_v35 = vld [vmem:[%s3559_s4 + $0x98] sm:$0xff] }
   0xd   :  { %1936 = vmatprep.mubr.msk.f32.mxu1 %vm82_vm0, %v57_v9  ;;  %481 = vmatpush1.msra.mxu1 %v466_v14  ;;  %v49_v36 = vld [vmem:[%s3558_s0 + $0x50] sm:$0xff]  ;;  %v64_v38 = vld [vmem:[%s3558_s0 + $0xc8] sm:$0xff]  ;;  %v452_v41 = vld [vmem:[%s3559_s4 + $0x80] sm:$0xff] }
   0xe   :  { %1913 = vmatmul.mubr.msk.f32.gmra.mxu0 %vm82_vm0, %v42_v10  ;;  %482 = vmatprep.subr.mxu1 %v465_v15  ;;  %v454_v37 = vld [vmem:[%s3559_s4 + $0x90] sm:$0xff]  ;;  %v453_v39 = vld [vmem:[%s3559_s4 + $0x88] sm:$0xff]  ;;  %v50_v42 = vld [vmem:[%s3558_s0 + $0x58] sm:$0xff] }
   0xf   :  { %1915 = vmatprep.mubr.msk.f32.mxu0 %vm82_vm0, %v43_v11  ;;  %483 = vmatpush1.msra.mxu1 %v464_v17  ;;  %v65_v40 = vld [vmem:[%s3558_s0 + $0xd0] sm:$0xff]  ;;  %v451_v43 = vld [vmem:[%s3559_s4 + $0x78] sm:$0xff]  ;;  %v51_v44 = vld [vmem:[%s3558_s0 + $0x60] sm:$0xff] }
  0x10   :  { %1937 = vmatmul.mubr.msk.f32.gmra.mxu1 %vm82_vm0, %v58_v12  ;;  %484 = vmatprep.subr.mxu1 %v463_v19  ;;  %v450_v45 = vld [vmem:[%s3559_s4 + $0x70] sm:$0xff]  ;;  %v66_v46 = vld [vmem:[%s3558_s0 + $0xd8] sm:$0xff]  ;;  %v449_v47 = vld [vmem:[%s3559_s4 + $0x68] sm:$0xff] }
  0x11   :  { %1939 = vmatprep.mubr.msk.f32.mxu1 %vm82_vm0, %v59_v16  ;;  %485 = vmatpush1.msra.mxu1 %v462_v21  ;;  %v67_v48 = vld [vmem:[%s3558_s0 + $0xe0] sm:$0xff]  ;;  %v52_v50 = vld [vmem:[%s3558_s0 + $0x68] sm:$0xff]  ;;  %v447_v51 = vld [vmem:[%s3559_s4 + $0x58] sm:$0xff] }
  0x12   :  { %1916 = vmatmul.mubr.msk.f32.gmra.mxu0 %vm82_vm0, %v44_v18  ;;  %486 = vmatprep.subr.mxu1 %v461_v23  ;;  %v448_v49 = vld [vmem:[%s3559_s4 + $0x60] sm:$0xff]  ;;  %v53_v52 = vld [vmem:[%s3558_s0 + $0x70] sm:$0xff]  ;;  %v68_v54 = vld [vmem:[%s3558_s0 + $0xe8] sm:$0xff] }
  0x13   :  { %1918 = vmatprep.mubr.msk.f32.mxu0 %vm82_vm0, %v45_v20  ;;  %487 = vmatpush1.msra.mxu1 %v460_v25  ;;  %v446_v53 = vld [vmem:[%s3559_s4 + $0x50] sm:$0xff]  ;;  %v445_v55 = vld [vmem:[%s3559_s4 + $0x48] sm:$0xff]  ;;  %v444_v57 = vld [vmem:[%s3559_s4 + $0x40] sm:$0xff] }
  0x14   :  { %1940 = vmatmul.mubr.msk.f32.gmra.mxu1 %vm82_vm0, %v60_v22  ;;  %488 = vmatprep.subr.mxu1 %v459_v27  ;;  %v69_v56 = vld [vmem:[%s3558_s0 + $0xf0] sm:$0xff]  ;;  %v54_v58 = vld [vmem:[%s3558_s0 + $0x78] sm:$0xff]  ;;  %v441_v62 = vld [vmem:[%s3559_s4 + $0x28] sm:$0xff] }
  0x15   :  { %1942 = vmatprep.mubr.msk.f32.mxu1 %vm82_vm0, %v61_v24  ;;  %489 = vmatpush1.msra.mxu1 %v458_v29  ;;  %v443_v59 = vld [vmem:[%s3559_s4 + $0x38] sm:$0xff]  ;;  %v442_v60 = vld [vmem:[%s3559_s4 + $0x30] sm:$0xff]  ;;  %v440_v63 = vld [vmem:[%s3559_s4 + $0x20] sm:$0xff] }
  0x16   :  { %1919 = vmatmul.mubr.msk.f32.gmra.mxu0 %vm82_vm0, %v46_v26  ;;  %490 = vmatprep.subr.mxu1 %v457_v31  ;;  %v70_v61 = vld [vmem:[%s3558_s0 + $0xf8] sm:$0xff]  ;;  %v438_v1 = vld [vmem:[%s3559_s4 + $0x10] sm:$0xff]  ;;  %v437_v2 = vld [vmem:[%s3559_s4 + $0x8] sm:$0xff] }
  0x17   :  { %1921 = vmatprep.mubr.msk.f32.mxu0 %vm82_vm0, %v47_v28  ;;  %491 = vmatpush1.msra.mxu1 %v456_v33  ;;  %v439_v0 = vld [vmem:[%s3559_s4 + $0x18] sm:$0xff]  ;;  %v436_v3 = vld [vmem:[%s3559_s4] sm:$0xff] }
  0x18   :  { %1943 = vmatmul.mubr.msk.f32.gmra.mxu1 %vm82_vm0, %v62_v30  ;;  %492 = vmatprep.subr.mxu1 %v455_v35  ;;  %v2537_v6 = vld [vmem:[%s3560_s3] ss:$0 sm:$0xff] }
  0x19   :  { %1945 = vmatprep.mubr.msk.f32.mxu1 %vm82_vm0, %v63_v32  ;;  %493 = vmatpush1.msra.mxu1 %v454_v37 }
  0x1a   :  { %1922 = vmatmul.mubr.msk.f32.gmra.mxu0 %vm82_vm0, %v48_v34  ;;  %494 = vmatprep.subr.mxu1 %v453_v39 }
  0x1b   :  { %1924 = vmatprep.mubr.msk.f32.mxu0 %vm82_vm0, %v49_v36  ;;  %495 = vmatpush1.msra.mxu1 %v452_v41 }
  0x1c   :  { %1946 = vmatmul.mubr.msk.f32.gmra.mxu1 %vm82_vm0, %v64_v38  ;;  %496 = vmatprep.subr.mxu1 %v451_v43 }
  0x1d   :  { %1948 = vmatprep.mubr.msk.f32.mxu1 %vm82_vm0, %v65_v40  ;;  %497 = vmatpush1.msra.mxu1 %v450_v45 }
  0x1e   :  { %1925 = vmatmul.mubr.msk.f32.gmra.mxu0 %vm82_vm0, %v50_v42  ;;  %498 = vmatprep.subr.mxu1 %v449_v47 }
  0x1f   :  { %1927 = vmatprep.mubr.msk.f32.mxu0 %vm82_vm0, %v51_v44  ;;  %499 = vmatpush1.msra.mxu1 %v448_v49 }
  0x20   :  { %1949 = vmatmul.mubr.msk.f32.gmra.mxu1 %vm82_vm0, %v66_v46  ;;  %500 = vmatprep.subr.mxu1 %v447_v51 }
  0x21   :  { %1951 = vmatprep.mubr.msk.f32.mxu1 %vm82_vm0, %v67_v48  ;;  %501 = vmatpush1.msra.mxu1 %v446_v53 }
  0x22   :  { %1928 = vmatmul.mubr.msk.f32.gmra.mxu0 %vm82_vm0, %v52_v50  ;;  %502 = vmatprep.subr.mxu1 %v445_v55 }
  0x23   :  { %1930 = vmatprep.mubr.msk.f32.mxu0 %vm82_vm0, %v53_v52  ;;  %503 = vmatpush1.msra.mxu1 %v444_v57 }
  0x24   :  { %1952 = vmatmul.mubr.msk.f32.gmra.mxu1 %vm82_vm0, %v68_v54  ;;  %504 = vmatprep.subr.mxu1 %v443_v59 }
  0x25   :  { %1954 = vmatprep.mubr.msk.f32.mxu1 %vm82_vm0, %v69_v56  ;;  %505 = vmatpush1.msra.mxu1 %v442_v60 }
  0x26   :  { %1931 = vmatmul.mubr.msk.f32.gmra.mxu0 %vm82_vm0, %v54_v58  ;;  %506 = vmatprep.subr.mxu1 %v441_v62 }
  0x27   :  { %507 = vmatpush1.msra.mxu1 %v440_v63 }
  0x28   :  { %1955 = vmatmul.mubr.msk.f32.gmra.mxu1 %vm82_vm0, %v70_v61  ;;  %508 = vmatprep.subr.mxu1 %v439_v0 }
  0x29   :  { %509 = vmatpush1.msra.mxu1 %v438_v1  ;;  %544 = vmatprep.mubr.f32.mxu1 %v2226_v4 }
  0x2a   :  { %510 = vmatprep.subr.mxu1 %v437_v2 }
  0x2b   :  { %511 = vmatpush1.msra.mxu1 %v436_v3 }
  0xca   :  { %v1911_v5 = vpop.f32.mrf.mxu0 }
  0xcb   :  { %v251_v10 = vadd.f32 %v1911_v5, %v2537_v6 }
  0xcc   :  { %v245_v7 = vpop.f32.mrf.mxu0  ;;  %v1935_v51 = vpop.f32.mrf.mxu1 }
  0xcd   :  { %v246_v8 = vadd.f32 %v2537_v6, %v245_v7  ;;  %v405_v13 = vmax.f32 %v251_v10, 0.0  ;;  %v331_v58 = vadd.f32 %v1935_v51, %v2537_v6 }
  0xce   :  { %v1914_v9 = vpop.f32.mrf.mxu0  ;;  %v325_v54 = vpop.f32.mrf.mxu1 }
  0xcf   :  { %v404_v11 = vmax.f32 %v246_v8, 0.0  ;;  %v261_v16 = vadd.f32 %v1914_v9, %v2537_v6  ;;  %v326_v56 = vadd.f32 %v2537_v6, %v325_v54  ;;  %v421_v61 = vmax.f32 %v331_v58, 0.0 }
  0xd0   :  { %v255_v12 = vpop.f32.mrf.mxu0  ;;  %v1938_v57 = vpop.f32.mrf.mxu1 }
  0xd1   :  { %545 = vmatmul.mubr.f32.vlgmr.msra.gmra.mxu1 %v404_v11  ;;  %v256_v14 = vadd.f32 %v2537_v6, %v255_v12  ;;  %v407_v19 = vmax.f32 %v261_v16, 0.0  ;;  %v420_v59 = vmax.f32 %v326_v56, 0.0  ;;  %v341_v0 = vadd.f32 %v1938_v57, %v2537_v6 }
  0xd2   :  { %550 = vmatprep.mubr.f32.mxu1 %v2226_v4  ;;  %v1917_v15 = vpop.f32.mrf.mxu0  ;;  %v335_v60 = vpop.f32.mrf.mxu1 }
  0xd3   :  { %v406_v17 = vmax.f32 %v256_v14, 0.0  ;;  %v271_v22 = vadd.f32 %v1917_v15, %v2537_v6  ;;  %v336_v62 = vadd.f32 %v2537_v6, %v335_v60  ;;  %v423_v3 = vmax.f32 %v341_v0, 0.0 }
  0xd4   :  { %v265_v18 = vpop.f32.mrf.mxu0  ;;  %v1941_v63 = vpop.f32.mrf.mxu1 }
  0xd5   :  { %551 = vmatmul.mubr.f32.gmra.mxu1 %v405_v13  ;;  %v266_v20 = vadd.f32 %v2537_v6, %v265_v18  ;;  %v409_v25 = vmax.f32 %v271_v22, 0.0  ;;  %v422_v1 = vmax.f32 %v336_v62, 0.0  ;;  %v351_v8 = vadd.f32 %v1941_v63, %v2537_v6 }
  0xd6   :  { %556 = vmatprep.mubr.f32.mxu1 %v2226_v4  ;;  %v1920_v21 = vpop.f32.mrf.mxu0  ;;  %v345_v2 = vpop.f32.mrf.mxu1 }
  0xd7   :  { %v408_v23 = vmax.f32 %v266_v20, 0.0  ;;  %v281_v28 = vadd.f32 %v1920_v21, %v2537_v6  ;;  %v346_v5 = vadd.f32 %v2537_v6, %v345_v2  ;;  %v425_v11 = vmax.f32 %v351_v8, 0.0  ;;  %v929_v21 = vld [vmem:[%s3561_s6] sm:$0xff] }
  0xd8   :  { %v275_v24 = vpop.f32.mrf.mxu0  ;;  %v1944_v7 = vpop.f32.mrf.mxu1 }
  0xd9   :  { %557 = vmatmul.mubr.f32.gmra.mxu1 %v406_v17  ;;  %v276_v26 = vadd.f32 %v2537_v6, %v275_v24  ;;  %v411_v31 = vmax.f32 %v281_v28, 0.0  ;;  %v424_v9 = vmax.f32 %v346_v5, 0.0  ;;  %v361_v14 = vadd.f32 %v1944_v7, %v2537_v6 }
  0xda   :  { %562 = vmatprep.mubr.f32.mxu1 %v2226_v4  ;;  %v1923_v27 = vpop.f32.mrf.mxu0  ;;  %v355_v10 = vpop.f32.mrf.mxu1 }
  0xdb   :  { %v410_v29 = vmax.f32 %v276_v26, 0.0  ;;  %v291_v34 = vadd.f32 %v1923_v27, %v2537_v6  ;;  %v356_v12 = vadd.f32 %v2537_v6, %v355_v10  ;;  %v427_v17 = vmax.f32 %v361_v14, 0.0  ;;  %v737_v14 = vld [vmem:[%s3565_s1] sm:$0xff] }
  0xdc   :  { %v285_v30 = vpop.f32.mrf.mxu0  ;;  %v1947_v13 = vpop.f32.mrf.mxu1 }
  0xdd   :  { %563 = vmatmul.mubr.f32.gmra.mxu1 %v407_v19  ;;  %v286_v32 = vadd.f32 %v2537_v6, %v285_v30  ;;  %v413_v37 = vmax.f32 %v291_v34, 0.0  ;;  %v426_v15 = vmax.f32 %v356_v12, 0.0  ;;  %v930_v19 = vld [vmem:[%s3561_s6 + $0x8] sm:$0xff]  ;;  %v371_v22 = vadd.f32 %v1947_v13, %v2537_v6 }
  0xde   :  { %568 = vmatprep.mubr.f32.mxu1 %v2226_v4  ;;  %v1926_v33 = vpop.f32.mrf.mxu0  ;;  %v365_v16 = vpop.f32.mrf.mxu1  ;;  %1957 = vmatprep.subr.mxu0 %v930_v19 }
  0xdf   :  { %v412_v35 = vmax.f32 %v286_v32, 0.0  ;;  %v301_v40 = vadd.f32 %v1926_v33, %v2537_v6  ;;  %v366_v18 = vadd.f32 %v2537_v6, %v365_v16  ;;  %1958 = vmatpush3.msra.mxu0 %v930_v19 }
  0xe0   :  { %v295_v36 = vpop.f32.mrf.mxu0  ;;  %v1950_v20 = vpop.f32.mrf.mxu1  ;;  %1959 = vmatprep.subr.mxu0 %v929_v21 }
  0xe1   :  { %569 = vmatmul.mubr.f32.gmra.mxu1 %v408_v23  ;;  %v296_v38 = vadd.f32 %v2537_v6, %v295_v36  ;;  %v415_v43 = vmax.f32 %v301_v40, 0.0  ;;  %v428_v23 = vmax.f32 %v366_v18, 0.0  ;;  %1960 = vmatpush3.msra.mxu0 %v929_v21  ;;  %v381_v28 = vadd.f32 %v1950_v20, %v2537_v6 }
  0xe2   :  { %574 = vmatprep.mubr.f32.mxu1 %v2226_v4  ;;  %v1929_v39 = vpop.f32.mrf.mxu0  ;;  %v375_v24 = vpop.f32.mrf.mxu1 }
  0xe3   :  { %v414_v41 = vmax.f32 %v296_v38, 0.0  ;;  %v311_v46 = vadd.f32 %v1929_v39, %v2537_v6  ;;  %v376_v26 = vadd.f32 %v2537_v6, %v375_v24  ;;  %v1307_v24 = vld [vmem:[%s3566_s8 + $0x78] sm:$0xff] }
  0xe4   :  { %v305_v42 = vpop.f32.mrf.mxu0  ;;  %v1953_v27 = vpop.f32.mrf.mxu1  ;;  %2009 = vmatprep.subr.mxu0 %v1307_v24 }
  0xe5   :  { %575 = vmatmul.mubr.f32.gmra.mxu1 %v409_v25  ;;  %v306_v44 = vadd.f32 %v2537_v6, %v305_v42  ;;  %v417_v49 = vmax.f32 %v311_v46, 0.0  ;;  %v429_v25 = vmax.f32 %v371_v22, 0.0  ;;  %v391_v34 = vadd.f32 %v1953_v27, %v2537_v6  ;;  %v738_v22 = vld [vmem:[%s3565_s1 + $0x8] sm:$0xff] }
  0xe6   :  { %580 = vmatprep.mubr.f32.mxu1 %v2226_v4  ;;  %v1932_v45 = vpop.f32.mrf.mxu0  ;;  %v385_v30 = vpop.f32.mrf.mxu1  ;;  %v470_v42 = vlaneseq }
  0xe7   :  { %v416_v47 = vmax.f32 %v306_v44, 0.0  ;;  %v321_v52 = vadd.f32 %v1932_v45, %v2537_v6  ;;  %v386_v32 = vadd.f32 %v2537_v6, %v385_v30  ;;  %v468_v45 = vld [vmem:[%s3562_s5] sm:$0x3] }
  0xe8   :  { %v315_v48 = vpop.f32.mrf.mxu0  ;;  %v1956_v33 = vpop.f32.mrf.mxu1 }
  0xe9   :  { %581 = vmatmul.mubr.f32.gmra.mxu1 %v410_v29  ;;  %v316_v50 = vadd.f32 %v2537_v6, %v315_v48  ;;  %v419_v55 = vmax.f32 %v321_v52, 0.0  ;;  %v430_v29 = vmax.f32 %v376_v26, 0.0  ;;  %v401_v39 = vadd.f32 %v1956_v33, %v2537_v6 }
  0xea   :  { %586 = vmatprep.mubr.f32.mxu1 %v2226_v4  ;;  %v395_v36 = vpop.f32.mrf.mxu1 }
  0xeb   :  { %v418_v53 = vmax.f32 %v316_v50, 0.0  ;;  %v396_v38 = vadd.f32 %v2537_v6, %v395_v36 }
  0xed   :  { %587 = vmatmul.mubr.f32.gmra.mxu1 %v411_v31  ;;  %v431_v31 = vmax.f32 %v381_v28, 0.0  ;;  %v434_v40 = vmax.f32 %v396_v38, 0.0 }
  0xee   :  { %592 = vmatprep.mubr.f32.mxu1 %v2226_v4 }
  0xf1   :  { %593 = vmatmul.mubr.f32.gmra.mxu1 %v412_v35  ;;  %v432_v35 = vmax.f32 %v386_v32, 0.0 }
  0xf2   :  { %598 = vmatprep.mubr.f32.mxu1 %v2226_v4 }
  0xf5   :  { %599 = vmatmul.mubr.f32.gmra.mxu1 %v413_v37  ;;  %v433_v37 = vmax.f32 %v391_v34, 0.0  ;;  %v739_v34 = vld [vmem:[%s3565_s1 + $0x10] sm:$0xff] }
  0xf6   :  { %604 = vmatprep.mubr.f32.mxu1 %v2226_v4 }
  0xf9   :  { %605 = vmatmul.mubr.f32.gmra.mxu1 %v414_v41  ;;  %v435_v41 = vmax.f32 %v401_v39, 0.0 }
  0xfa   :  { %610 = vmatprep.mubr.f32.mxu1 %v2226_v4 }
  0xfd   :  { %611 = vmatmul.mubr.f32.gmra.mxu1 %v415_v43  ;;  %v471_v43 = vshrl.u32 %v470_v42, 7 }
  0xfe   :  { %616 = vmatprep.mubr.f32.mxu1 %v2226_v4 }
  0xff   :  { %v472_v44 = vsub.s32 0, %v471_v43  ;;  %v476_v46 = vsub.s32 1, %v471_v43 }
 0x101   :  { %617 = vmatmul.mubr.f32.gmra.mxu1 %v416_v47  ;;  %v2611_v47 = vrot.slane %v468_v45, %v472_v44  ;;  %v2613_v48 = vrot.slane %v468_v45, %v476_v46  ;;  %v740_v45 = vld [vmem:[%s3565_s1 + $0x18] sm:$0xff]  ;;  %v1305_v46 = vld [vmem:[%s3566_s8 + $0x68] sm:$0xff] }
 0x102   :  { %622 = vmatprep.mubr.f32.mxu1 %v2226_v4 }
 0x105   :  { %623 = vmatmul.mubr.f32.gmra.mxu1 %v417_v49 }
 0x106   :  { %628 = vmatprep.mubr.f32.mxu1 %v2226_v4 }
 0x109   :  { %629 = vmatmul.mubr.f32.gmra.mxu1 %v418_v53 }
 0x10a   :  { %634 = vmatprep.mubr.f32.mxu1 %v2226_v4 }
 0x10d   :  { %635 = vmatmul.mubr.f32.gmra.mxu1 %v419_v55 }
 0x10e   :  { %640 = vmatprep.mubr.f32.mxu1 %v2226_v4 }
 0x111   :  { %641 = vmatmul.mubr.f32.gmra.mxu1 %v420_v59 }
 0x112   :  { %646 = vmatprep.mubr.f32.mxu1 %v2226_v4 }
 0x115   :  { %647 = vmatmul.mubr.f32.gmra.mxu1 %v421_v61 }
 0x116   :  { %652 = vmatprep.mubr.f32.mxu1 %v2226_v4 }
 0x119   :  { %653 = vmatmul.mubr.f32.gmra.mxu1 %v422_v1 }
 0x11a   :  { %658 = vmatprep.mubr.f32.mxu1 %v2226_v4 }
 0x11d   :  { %659 = vmatmul.mubr.f32.gmra.mxu1 %v423_v3 }
 0x11e   :  { %664 = vmatprep.mubr.f32.mxu1 %v2226_v4 }
 0x121   :  { %665 = vmatmul.mubr.f32.gmra.mxu1 %v424_v9 }
 0x122   :  { %670 = vmatprep.mubr.f32.mxu1 %v2226_v4 }
 0x125   :  { %671 = vmatmul.mubr.f32.gmra.mxu1 %v425_v11 }
 0x126   :  { %676 = vmatprep.mubr.f32.mxu1 %v2226_v4 }
 0x129   :  { %677 = vmatmul.mubr.f32.gmra.mxu1 %v426_v15 }
 0x12a   :  { %682 = vmatprep.mubr.f32.mxu1 %v2226_v4 }
 0x12d   :  { %683 = vmatmul.mubr.f32.gmra.mxu1 %v427_v17 }
 0x12e   :  { %688 = vmatprep.mubr.f32.mxu1 %v2226_v4 }
 0x131   :  { %689 = vmatmul.mubr.f32.gmra.mxu1 %v428_v23 }
 0x132   :  { %694 = vmatprep.mubr.f32.mxu1 %v2226_v4 }
 0x135   :  { %695 = vmatmul.mubr.f32.gmra.mxu1 %v429_v25 }
 0x136   :  { %700 = vmatprep.mubr.f32.mxu1 %v2226_v4 }
 0x139   :  { %701 = vmatmul.mubr.f32.gmra.mxu1 %v430_v29 }
 0x13a   :  { %706 = vmatprep.mubr.f32.mxu1 %v2226_v4 }
 0x13d   :  { %707 = vmatmul.mubr.f32.gmra.mxu1 %v431_v31 }
 0x13e   :  { %712 = vmatprep.mubr.f32.mxu1 %v2226_v4 }
 0x141   :  { %713 = vmatmul.mubr.f32.gmra.mxu1 %v432_v35 }
 0x142   :  { %718 = vmatprep.mubr.f32.mxu1 %v2226_v4 }
 0x145   :  { %719 = vmatmul.mubr.f32.gmra.mxu1 %v433_v37 }
 0x146   :  { %724 = vmatprep.mubr.f32.mxu1 %v2226_v4 }
 0x149   :  { %725 = vmatmul.mubr.f32.gmra.mxu1 %v434_v40  ;;  %v1306_v40 = vld [vmem:[%s3566_s8 + $0x70] sm:$0xff] }
 0x14a   :  { %730 = vmatprep.mubr.f32.mxu1 %v2226_v4 }
 0x14d   :  { %731 = vmatmul.mubr.f32.gmra.mxu1 %v435_v41 }
 0x191   :  { %v546_v49 = vpop.f32.mrf.mxu1 }
 0x192   :  { %v547_v6 = vadd.f32 %v546_v49, %v2611_v47 }
 0x193   :  { %v548_v50 = vpop.f32.mrf.mxu1 }
 0x194   :  { %1604 = vst.msk [vmem:[%s3563_s11] sm:$0xff] %vm938_vm1, %v547_v6  ;;  %v549_v4 = vadd.f32 %v548_v50, %v2613_v48 }
 0x195   :  { %v552_v51 = vpop.f32.mrf.mxu1 }
 0x196   :  { %v769_v52 = vmul.f32 0.5, %v549_v4  ;;  %1636 = vst.msk [vmem:[%s3564_s12] sm:$0xff] %vm938_vm1, %v549_v4  ;;  %v2626_v53 = vadd.f32 %v552_v51, %v2611_v47 }
 0x197   :  { %v554_v54 = vpop.f32.mrf.mxu1 }
 0x198   :  { %v801_v55 = vmul.f32 1.442695, %v769_v52  ;;  %1605 = vst.msk [vmem:[%s3563_s11 + $0x8] sm:$0xff] %vm938_vm1, %v2626_v53  ;;  %v555_v56 = vadd.f32 %v554_v54, %v2613_v48  ;;  %v1304_v52 = vld [vmem:[%s3566_s8 + $0x60] sm:$0xff] }
 0x199   :  { %v558_v57 = vpop.f32.mrf.mxu1 }
 0x19a   :  { %2098 = vpow2.f32 %v801_v55  ;;  %v770_v58 = vmul.f32 0.5, %v555_v56  ;;  %1637 = vst.msk [vmem:[%s3564_s12 + $0x8] sm:$0xff] %vm938_vm1, %v555_v56  ;;  %v2639_v59 = vadd.f32 %v558_v57, %v2611_v47  ;;  %v741_v57 = vld [vmem:[%s3565_s1 + $0x20] sm:$0xff] }
 0x19b   :  { %v560_v60 = vpop.f32.mrf.mxu1 }
 0x19c   :  { %v803_v61 = vmul.f32 1.442695, %v770_v58  ;;  %1606 = vst.msk [vmem:[%s3563_s11 + $0x10] sm:$0xff] %vm938_vm1, %v2639_v59  ;;  %v561_v62 = vadd.f32 %v560_v60, %v2613_v48  ;;  %v1303_v58 = vld [vmem:[%s3566_s8 + $0x58] sm:$0xff] }
 0x19d   :  { %v564_v63 = vpop.f32.mrf.mxu1 }
 0x19e   :  { %2100 = vpow2.f32 %v803_v61  ;;  %v771_v0 = vmul.f32 0.5, %v561_v62  ;;  %1638 = vst.msk [vmem:[%s3564_s12 + $0x10] sm:$0xff] %vm938_vm1, %v561_v62  ;;  %v2652_v1 = vadd.f32 %v564_v63, %v2611_v47 }
 0x19f   :  { %v566_v2 = vpop.f32.mrf.mxu1 }
 0x1a0   :  { %v805_v3 = vmul.f32 1.442695, %v771_v0  ;;  %1607 = vst.msk [vmem:[%s3563_s11 + $0x18] sm:$0xff] %vm938_vm1, %v2652_v1  ;;  %v567_v5 = vadd.f32 %v566_v2, %v2613_v48  ;;  %v1302_v0 = vld [vmem:[%s3566_s8 + $0x50] sm:$0xff] }
 0x1a1   :  { %v570_v7 = vpop.f32.mrf.mxu1 }
 0x1a2   :  { %2102 = vpow2.f32 %v805_v3  ;;  %v772_v8 = vmul.f32 0.5, %v567_v5  ;;  %1639 = vst.msk [vmem:[%s3564_s12 + $0x18] sm:$0xff] %vm938_vm1, %v567_v5  ;;  %v2665_v9 = vadd.f32 %v570_v7, %v2611_v47  ;;  %v742_v7 = vld [vmem:[%s3565_s1 + $0x28] sm:$0xff] }
 0x1a3   :  { %v572_v10 = vpop.f32.mrf.mxu1 }
 0x1a4   :  { %v807_v11 = vmul.f32 1.442695, %v772_v8  ;;  %1608 = vst.msk [vmem:[%s3563_s11 + $0x20] sm:$0xff] %vm938_vm1, %v2665_v9  ;;  %v573_v12 = vadd.f32 %v572_v10, %v2613_v48  ;;  %v1301_v8 = vld [vmem:[%s3566_s8 + $0x48] sm:$0xff] }
 0x1a5   :  { %v576_v13 = vpop.f32.mrf.mxu1 }
 0x1a6   :  { %2104 = vpow2.f32 %v807_v11  ;;  %v773_v15 = vmul.f32 0.5, %v573_v12  ;;  %1640 = vst.msk [vmem:[%s3564_s12 + $0x20] sm:$0xff] %vm938_vm1, %v573_v12  ;;  %v2681_v16 = vadd.f32 %v576_v13, %v2611_v47 }
 0x1a7   :  { %v2099_v17 = vpop.eup %2098  ;;  %v578_v18 = vpop.f32.mrf.mxu1 }
 0x1a8   :  { %v809_v19 = vmul.f32 1.442695, %v773_v15  ;;  %1609 = vst.msk [vmem:[%s3563_s11 + $0x28] sm:$0xff] %vm938_vm1, %v2681_v16  ;;  %v579_v20 = vadd.f32 %v578_v18, %v2613_v48  ;;  %v865_v21 = vmul.f32 %v2099_v17, %v737_v14  ;;  %v1300_v15 = vld [vmem:[%s3566_s8 + $0x40] sm:$0xff] }
 0x1a9   :  { %v582_v23 = vpop.f32.mrf.mxu1 }
 0x1aa   :  { %2106 = vpow2.f32 %v809_v19  ;;  %v774_v25 = vmul.f32 0.5, %v579_v20  ;;  %1641 = vst.msk [vmem:[%s3564_s12 + $0x28] sm:$0xff] %vm938_vm1, %v579_v20  ;;  %v2700_v26 = vadd.f32 %v582_v23, %v2611_v47  ;;  %v897_v27 = vadd.f32 %v865_v21, %v547_v6  ;;  %v743_v20 = vld [vmem:[%s3565_s1 + $0x30] sm:$0xff]  ;;  %v1299_v21 = vld [vmem:[%s3566_s8 + $0x38] sm:$0xff] }
 0x1ab   :  { %v2101_v28 = vpop.eup %2100  ;;  %v584_v29 = vpop.f32.mrf.mxu1 }
 0x1ac   :  { %v866_v30 = vmul.f32 %v2101_v28, %v738_v22  ;;  %v811_v31 = vmul.f32 1.442695, %v774_v25  ;;  %1610 = vst.msk [vmem:[%s3563_s11 + $0x30] sm:$0xff] %vm938_vm1, %v2700_v26  ;;  %v585_v32 = vadd.f32 %v584_v29, %v2613_v48  ;;  %1961 = vmatprep.mubr.msk.f32.mxu0 %vm938_vm1, %v897_v27  ;;  %1668 = vst.msk [vmem:[%s3567_s13] sm:$0xff] %vm938_vm1, %v897_v27  ;;  %v1298_v28 = vld [vmem:[%s3566_s8 + $0x30] sm:$0xff] }
 0x1ad   :  { %v588_v33 = vpop.f32.mrf.mxu1 }
 0x1ae   :  { %2108 = vpow2.f32 %v811_v31  ;;  %v775_v35 = vmul.f32 0.5, %v585_v32  ;;  %1642 = vst.msk [vmem:[%s3564_s12 + $0x30] sm:$0xff] %vm938_vm1, %v585_v32  ;;  %v2721_v36 = vadd.f32 %v588_v33, %v2611_v47  ;;  %v898_v37 = vadd.f32 %v866_v30, %v2626_v53  ;;  %v744_v32 = vld [vmem:[%s3565_s1 + $0x38] sm:$0xff]  ;;  %v1297_v33 = vld [vmem:[%s3566_s8 + $0x28] sm:$0xff] }
 0x1af   :  { %v2103_v38 = vpop.eup %2102  ;;  %v590_v39 = vpop.f32.mrf.mxu1 }
 0x1b0   :  { %v813_v41 = vmul.f32 1.442695, %v775_v35  ;;  %1611 = vst.msk [vmem:[%s3563_s11 + $0x38] sm:$0xff] %vm938_vm1, %v2721_v36  ;;  %v591_v42 = vadd.f32 %v590_v39, %v2613_v48  ;;  %1962 = vmatmul.mubr.msk.f32.vlgmr.msra.gmra.mxu0 %vm938_vm1, %v898_v37  ;;  %1669 = vst.msk [vmem:[%s3567_s13 + $0x8] sm:$0xff] %vm938_vm1, %v898_v37  ;;  %v867_v43 = vmul.f32 %v2103_v38, %v739_v34 }
 0x1b1   :  { %v594_v44 = vpop.f32.mrf.mxu1  ;;  %2010 = vmatpush3.msra.mxu0 %v1307_v24 }
 0x1b2   :  { %2110 = vpow2.f32 %v813_v41  ;;  %v776_v49 = vmul.f32 0.5, %v591_v42  ;;  %1643 = vst.msk [vmem:[%s3564_s12 + $0x38] sm:$0xff] %vm938_vm1, %v591_v42  ;;  %v2749_v6 = vadd.f32 %v594_v44, %v2611_v47  ;;  %v899_v50 = vadd.f32 %v867_v43, %v2639_v59  ;;  %2011 = vmatprep.subr.mxu0 %v1306_v40  ;;  %v745_v44 = vld [vmem:[%s3565_s1 + $0x40] sm:$0xff] }
 0x1b3   :  { %v2105_v4 = vpop.eup %2104  ;;  %v596_v51 = vpop.f32.mrf.mxu1  ;;  %2012 = vmatpush3.msra.mxu0 %v1306_v40  ;;  %v1296_v40 = vld [vmem:[%s3566_s8 + $0x20] sm:$0xff] }
 0x1b4   :  { %v815_v53 = vmul.f32 1.442695, %v776_v49  ;;  %1612 = vst.msk [vmem:[%s3563_s11 + $0x40] sm:$0xff] %vm938_vm1, %v2749_v6  ;;  %v597_v54 = vadd.f32 %v596_v51, %v2613_v48  ;;  %1964 = vmatprep.mubr.msk.f32.mxu0 %vm938_vm1, %v899_v50  ;;  %1670 = vst.msk [vmem:[%s3567_s13 + $0x10] sm:$0xff] %vm938_vm1, %v899_v50  ;;  %v868_v55 = vmul.f32 %v2105_v4, %v740_v45  ;;  %2013 = vmatprep.subr.mxu0 %v1305_v46 }
 0x1b5   :  { %v600_v56 = vpop.f32.mrf.mxu1  ;;  %2014 = vmatpush3.msra.mxu0 %v1305_v46 }
 0x1b6   :  { %2112 = vpow2.f32 %v815_v53  ;;  %v777_v59 = vmul.f32 0.5, %v597_v54  ;;  %1644 = vst.msk [vmem:[%s3564_s12 + $0x40] sm:$0xff] %vm938_vm1, %v597_v54  ;;  %v2777_v60 = vadd.f32 %v600_v56, %v2611_v47  ;;  %v900_v61 = vadd.f32 %v868_v55, %v2652_v1  ;;  %2015 = vmatprep.subr.mxu0 %v1304_v52  ;;  %v746_v54 = vld [vmem:[%s3565_s1 + $0x48] sm:$0xff] }
 0x1b7   :  { %v2107_v62 = vpop.eup %2106  ;;  %v602_v63 = vpop.f32.mrf.mxu1  ;;  %2016 = vmatpush3.msra.mxu0 %v1304_v52 }
 0x1b8   :  { %v817_v2 = vmul.f32 1.442695, %v777_v59  ;;  %1613 = vst.msk [vmem:[%s3563_s11 + $0x48] sm:$0xff] %vm938_vm1, %v2777_v60  ;;  %v603_v3 = vadd.f32 %v602_v63, %v2613_v48  ;;  %1965 = vmatmul.mubr.msk.f32.gmra.mxu0 %vm938_vm1, %v900_v61  ;;  %1671 = vst.msk [vmem:[%s3567_s13 + $0x18] sm:$0xff] %vm938_vm1, %v900_v61  ;;  %v869_v1 = vmul.f32 %v2107_v62, %v741_v57  ;;  %2017 = vmatprep.subr.mxu0 %v1303_v58 }
 0x1b9   :  { %v606_v5 = vpop.f32.mrf.mxu1  ;;  %2018 = vmatpush3.msra.mxu0 %v1303_v58 }
 0x1ba   :  { %2114 = vpow2.f32 %v817_v2  ;;  %v778_v10 = vmul.f32 0.5, %v603_v3  ;;  %1645 = vst.msk [vmem:[%s3564_s12 + $0x48] sm:$0xff] %vm938_vm1, %v603_v3  ;;  %v2805_v11 = vadd.f32 %v606_v5, %v2611_v47  ;;  %v901_v12 = vadd.f32 %v869_v1, %v2665_v9  ;;  %2019 = vmatprep.subr.mxu0 %v1302_v0 }
 0x1bb   :  { %v2109_v13 = vpop.eup %2108  ;;  %v608_v14 = vpop.f32.mrf.mxu1  ;;  %2020 = vmatpush3.msra.mxu0 %v1302_v0  ;;  %v747_v0 = vld [vmem:[%s3565_s1 + $0x50] sm:$0xff] }
 0x1bc   :  { %v819_v17 = vmul.f32 1.442695, %v778_v10  ;;  %1614 = vst.msk [vmem:[%s3563_s11 + $0x50] sm:$0xff] %vm938_vm1, %v2805_v11  ;;  %v609_v18 = vadd.f32 %v608_v14, %v2613_v48  ;;  %1967 = vmatprep.mubr.msk.f32.mxu0 %vm938_vm1, %v901_v12  ;;  %1672 = vst.msk [vmem:[%s3567_s13 + $0x20] sm:$0xff] %vm938_vm1, %v901_v12  ;;  %v870_v9 = vmul.f32 %v2109_v13, %v742_v7  ;;  %2021 = vmatprep.subr.mxu0 %v1301_v8  ;;  %v748_v13 = vld [vmem:[%s3565_s1 + $0x58] sm:$0xff] }
 0x1bd   :  { %v612_v19 = vpop.f32.mrf.mxu1  ;;  %2022 = vmatpush3.msra.mxu0 %v1301_v8 }
 0x1be   :  { %2116 = vpow2.f32 %v819_v17  ;;  %v779_v22 = vmul.f32 0.5, %v609_v18  ;;  %1646 = vst.msk [vmem:[%s3564_s12 + $0x50] sm:$0xff] %vm938_vm1, %v609_v18  ;;  %v2833_v23 = vadd.f32 %v612_v19, %v2611_v47  ;;  %v902_v24 = vadd.f32 %v870_v9, %v2681_v16  ;;  %2023 = vmatprep.subr.mxu0 %v1300_v15 }
 0x1bf   :  { %v2111_v25 = vpop.eup %2110  ;;  %v614_v27 = vpop.f32.mrf.mxu1  ;;  %2024 = vmatpush3.msra.mxu0 %v1300_v15 }
 0x1c0   :  { %v821_v29 = vmul.f32 1.442695, %v779_v22  ;;  %1615 = vst.msk [vmem:[%s3563_s11 + $0x58] sm:$0xff] %vm938_vm1, %v2833_v23  ;;  %v615_v30 = vadd.f32 %v614_v27, %v2613_v48  ;;  %1968 = vmatmul.mubr.msk.f32.gmra.mxu0 %vm938_vm1, %v902_v24  ;;  %1673 = vst.msk [vmem:[%s3567_s13 + $0x28] sm:$0xff] %vm938_vm1, %v902_v24  ;;  %v871_v16 = vmul.f32 %v2111_v25, %v743_v20  ;;  %2025 = vmatprep.subr.mxu0 %v1299_v21  ;;  %v749_v22 = vld [vmem:[%s3565_s1 + $0x60] sm:$0xff] }
 0x1c1   :  { %v618_v31 = vpop.f32.mrf.mxu1  ;;  %2026 = vmatpush3.msra.mxu0 %v1299_v21 }
 0x1c2   :  { %2118 = vpow2.f32 %v821_v29  ;;  %v780_v34 = vmul.f32 0.5, %v615_v30  ;;  %1647 = vst.msk [vmem:[%s3564_s12 + $0x58] sm:$0xff] %vm938_vm1, %v615_v30  ;;  %v2861_v35 = vadd.f32 %v618_v31, %v2611_v47  ;;  %v903_v37 = vadd.f32 %v871_v16, %v2700_v26  ;;  %2027 = vmatprep.subr.mxu0 %v1298_v28 }
 0x1c3   :  { %v2113_v38 = vpop.eup %2112  ;;  %v620_v39 = vpop.f32.mrf.mxu1  ;;  %2028 = vmatpush3.msra.mxu0 %v1298_v28 }
 0x1c4   :  { %v823_v41 = vmul.f32 1.442695, %v780_v34  ;;  %1616 = vst.msk [vmem:[%s3563_s11 + $0x60] sm:$0xff] %vm938_vm1, %v2861_v35  ;;  %v621_v42 = vadd.f32 %v620_v39, %v2613_v48  ;;  %1970 = vmatprep.mubr.msk.f32.mxu0 %vm938_vm1, %v903_v37  ;;  %1674 = vst.msk [vmem:[%s3567_s13 + $0x30] sm:$0xff] %vm938_vm1, %v903_v37  ;;  %v872_v26 = vmul.f32 %v2113_v38, %v744_v32  ;;  %2029 = vmatprep.subr.mxu0 %v1297_v33  ;;  %v750_v32 = vld [vmem:[%s3565_s1 + $0x68] sm:$0xff] }
 0x1c5   :  { %v624_v43 = vpop.f32.mrf.mxu1  ;;  %2030 = vmatpush3.msra.mxu0 %v1297_v33 }
 0x1c6   :  { %2120 = vpow2.f32 %v823_v41  ;;  %v781_v45 = vmul.f32 0.5, %v621_v42  ;;  %1648 = vst.msk [vmem:[%s3564_s12 + $0x60] sm:$0xff] %vm938_vm1, %v621_v42  ;;  %v2886_v46 = vadd.f32 %v624_v43, %v2611_v47  ;;  %v904_v49 = vadd.f32 %v872_v26, %v2721_v36  ;;  %2031 = vmatprep.subr.mxu0 %v1296_v40  ;;  %v751_v26 = vld [vmem:[%s3565_s1 + $0x70] sm:$0xff] }
 0x1c7   :  { %v2115_v50 = vpop.eup %2114  ;;  %v626_v4 = vpop.f32.mrf.mxu1  ;;  %2032 = vmatpush3.msra.mxu0 %v1296_v40 }
 0x1c8   :  { %v825_v51 = vmul.f32 1.442695, %v781_v45  ;;  %1617 = vst.msk [vmem:[%s3563_s11 + $0x68] sm:$0xff] %vm938_vm1, %v2886_v46  ;;  %v627_v52 = vadd.f32 %v626_v4, %v2613_v48  ;;  %1971 = vmatmul.mubr.msk.f32.gmra.mxu0 %vm938_vm1, %v904_v49  ;;  %1675 = vst.msk [vmem:[%s3567_s13 + $0x38] sm:$0xff] %vm938_vm1, %v904_v49  ;;  %v873_v36 = vmul.f32 %v2115_v50, %v745_v44 }
 0x1c9   :  { %v630_v53 = vpop.f32.mrf.mxu1 }
 0x1ca   :  { %2122 = vpow2.f32 %v825_v51  ;;  %v782_v55 = vmul.f32 0.5, %v627_v52  ;;  %1649 = vst.msk [vmem:[%s3564_s12 + $0x68] sm:$0xff] %vm938_vm1, %v627_v52  ;;  %v2908_v56 = vadd.f32 %v630_v53, %v2611_v47  ;;  %v905_v57 = vadd.f32 %v873_v36, %v2749_v6  ;;  %v752_v36 = vld [vmem:[%s3565_s1 + $0x78] sm:$0xff] }
 0x1cb   :  { %v2117_v58 = vpop.eup %2116  ;;  %v632_v59 = vpop.f32.mrf.mxu1 }
 0x1cc   :  { %v827_v61 = vmul.f32 1.442695, %v782_v55  ;;  %1618 = vst.msk [vmem:[%s3563_s11 + $0x70] sm:$0xff] %vm938_vm1, %v2908_v56  ;;  %v633_v62 = vadd.f32 %v632_v59, %v2613_v48  ;;  %1973 = vmatprep.mubr.msk.f32.mxu0 %vm938_vm1, %v905_v57  ;;  %1676 = vst.msk [vmem:[%s3567_s13 + $0x40] sm:$0xff] %vm938_vm1, %v905_v57  ;;  %v874_v63 = vmul.f32 %v2117_v58, %v746_v54 }
 0x1cd   :  { %v636_v6 = vpop.f32.mrf.mxu1 }
 0x1ce   :  { %2124 = vpow2.f32 %v827_v61  ;;  %v783_v2 = vmul.f32 0.5, %v633_v62  ;;  %1650 = vst.msk [vmem:[%s3564_s12 + $0x70] sm:$0xff] %vm938_vm1, %v633_v62  ;;  %v2930_v3 = vadd.f32 %v636_v6, %v2611_v47  ;;  %v906_v1 = vadd.f32 %v874_v63, %v2777_v60  ;;  %v753_v63 = vld [vmem:[%s3565_s1 + $0x80] sm:$0xff] }
 0x1cf   :  { %v2119_v5 = vpop.eup %2118  ;;  %v638_v7 = vpop.f32.mrf.mxu1 }
 0x1d0   :  { %v829_v8 = vmul.f32 1.442695, %v783_v2  ;;  %1619 = vst.msk [vmem:[%s3563_s11 + $0x78] sm:$0xff] %vm938_vm1, %v2930_v3  ;;  %v639_v10 = vadd.f32 %v638_v7, %v2613_v48  ;;  %1974 = vmatmul.mubr.msk.f32.gmra.mxu0 %vm938_vm1, %v906_v1  ;;  %1677 = vst.msk [vmem:[%s3567_s13 + $0x48] sm:$0xff] %vm938_vm1, %v906_v1  ;;  %v875_v12 = vmul.f32 %v2119_v5, %v747_v0 }
 0x1d1   :  { %v642_v60 = vpop.f32.mrf.mxu1 }
 0x1d2   :  { %2126 = vpow2.f32 %v829_v8  ;;  %v784_v14 = vmul.f32 0.5, %v639_v10  ;;  %1651 = vst.msk [vmem:[%s3564_s12 + $0x78] sm:$0xff] %vm938_vm1, %v639_v10  ;;  %v2952_v15 = vadd.f32 %v642_v60, %v2611_v47  ;;  %v907_v17 = vadd.f32 %v875_v12, %v2805_v11  ;;  %v754_v12 = vld [vmem:[%s3565_s1 + $0x88] sm:$0xff] }
 0x1d3   :  { %v2121_v18 = vpop.eup %2120  ;;  %v644_v9 = vpop.f32.mrf.mxu1 }
 0x1d4   :  { %v831_v19 = vmul.f32 1.442695, %v784_v14  ;;  %1620 = vst.msk [vmem:[%s3563_s11 + $0x80] sm:$0xff] %vm938_vm1, %v2952_v15  ;;  %v645_v20 = vadd.f32 %v644_v9, %v2613_v48  ;;  %1976 = vmatprep.mubr.msk.f32.mxu0 %vm938_vm1, %v907_v17  ;;  %1678 = vst.msk [vmem:[%s3567_s13 + $0x50] sm:$0xff] %vm938_vm1, %v907_v17  ;;  %v876_v21 = vmul.f32 %v2121_v18, %v748_v13 }
 0x1d5   :  { %v648_v11 = vpop.f32.mrf.mxu1 }
 0x1d6   :  { %2128 = vpow2.f32 %v831_v19  ;;  %v785_v24 = vmul.f32 0.5, %v645_v20  ;;  %1652 = vst.msk [vmem:[%s3564_s12 + $0x80] sm:$0xff] %vm938_vm1, %v645_v20  ;;  %v2974_v25 = vadd.f32 %v648_v11, %v2611_v47  ;;  %v908_v27 = vadd.f32 %v876_v21, %v2833_v23  ;;  %v755_v21 = vld [vmem:[%s3565_s1 + $0x90] sm:$0xff] }
 0x1d7   :  { %v2123_v28 = vpop.eup %2122  ;;  %v650_v29 = vpop.f32.mrf.mxu1 }
 0x1d8   :  { %v833_v30 = vmul.f32 1.442695, %v785_v24  ;;  %1621 = vst.msk [vmem:[%s3563_s11 + $0x88] sm:$0xff] %vm938_vm1, %v2974_v25  ;;  %v651_v16 = vadd.f32 %v650_v29, %v2613_v48  ;;  %1977 = vmatmul.mubr.msk.f32.gmra.mxu0 %vm938_vm1, %v908_v27  ;;  %1679 = vst.msk [vmem:[%s3567_s13 + $0x58] sm:$0xff] %vm938_vm1, %v908_v27  ;;  %v877_v31 = vmul.f32 %v2123_v28, %v749_v22  ;;  %v1295_v29 = vld [vmem:[%s3566_s8 + $0x18] sm:$0xff] }
 0x1d9   :  { %v654_v23 = vpop.f32.mrf.mxu1  ;;  %2033 = vmatprep.subr.mxu0 %v1295_v29 }
 0x1da   :  { %2130 = vpow2.f32 %v833_v30  ;;  %v786_v33 = vmul.f32 0.5, %v651_v16  ;;  %1653 = vst.msk [vmem:[%s3564_s12 + $0x88] sm:$0xff] %vm938_vm1, %v651_v16  ;;  %v2996_v34 = vadd.f32 %v654_v23, %v2611_v47  ;;  %v909_v37 = vadd.f32 %v877_v31, %v2861_v35  ;;  %v756_v23 = vld [vmem:[%s3565_s1 + $0x98] sm:$0xff]  ;;  %2034 = vmatpush3.msra.mxu0 %v1295_v29 }
 0x1db   :  { %v2125_v38 = vpop.eup %2124  ;;  %v656_v39 = vpop.f32.mrf.mxu1 }
 0x1dc   :  { %v835_v40 = vmul.f32 1.442695, %v786_v33  ;;  %1622 = vst.msk [vmem:[%s3563_s11 + $0x90] sm:$0xff] %vm938_vm1, %v2996_v34  ;;  %v657_v41 = vadd.f32 %v656_v39, %v2613_v48  ;;  %1979 = vmatprep.mubr.msk.f32.mxu0 %vm938_vm1, %v909_v37  ;;  %1680 = vst.msk [vmem:[%s3567_s13 + $0x60] sm:$0xff] %vm938_vm1, %v909_v37  ;;  %v878_v42 = vmul.f32 %v2125_v38, %v750_v32  ;;  %v1294_v32 = vld [vmem:[%s3566_s8 + $0x10] sm:$0xff] }
 0x1dd   :  { %v660_v35 = vpop.f32.mrf.mxu1  ;;  %2035 = vmatprep.subr.mxu0 %v1294_v32 }
 0x1de   :  { %2132 = vpow2.f32 %v835_v40  ;;  %v787_v43 = vmul.f32 0.5, %v657_v41  ;;  %1654 = vst.msk [vmem:[%s3564_s12 + $0x90] sm:$0xff] %vm938_vm1, %v657_v41  ;;  %v3018_v44 = vadd.f32 %v660_v35, %v2611_v47  ;;  %v910_v45 = vadd.f32 %v878_v42, %v2886_v46  ;;  %2036 = vmatpush3.msra.mxu0 %v1294_v32  ;;  %v1293_v41 = vld [vmem:[%s3566_s8 + $0x8] sm:$0xff] }
 0x1df   :  { %v2127_v49 = vpop.eup %2126  ;;  %v662_v50 = vpop.f32.mrf.mxu1  ;;  %2037 = vmatprep.subr.mxu0 %v1293_v41  ;;  %v762_v32 = vld [vmem:[%s3565_s1 + $0xc8] sm:$0xff] }
 0x1e0   :  { %v837_v4 = vmul.f32 1.442695, %v787_v43  ;;  %1623 = vst.msk [vmem:[%s3563_s11 + $0x98] sm:$0xff] %vm938_vm1, %v3018_v44  ;;  %v663_v51 = vadd.f32 %v662_v50, %v2613_v48  ;;  %1980 = vmatmul.mubr.msk.f32.gmra.mxu0 %vm938_vm1, %v910_v45  ;;  %1681 = vst.msk [vmem:[%s3567_s13 + $0x68] sm:$0xff] %vm938_vm1, %v910_v45  ;;  %v879_v52 = vmul.f32 %v2127_v49, %v751_v26  ;;  %v757_v43 = vld [vmem:[%s3565_s1 + $0xa0] sm:$0xff] }
 0x1e1   :  { %v666_v46 = vpop.f32.mrf.mxu1  ;;  %2038 = vmatpush3.msra.mxu0 %v1293_v41  ;;  %v1292_v45 = vld [vmem:[%s3566_s8] sm:$0xff] }
 0x1e2   :  { %2134 = vpow2.f32 %v837_v4  ;;  %v788_v53 = vmul.f32 0.5, %v663_v51  ;;  %1655 = vst.msk [vmem:[%s3564_s12 + $0x98] sm:$0xff] %vm938_vm1, %v663_v51  ;;  %v3040_v54 = vadd.f32 %v666_v46, %v2611_v47  ;;  %v911_v55 = vadd.f32 %v879_v52, %v2908_v56  ;;  %2039 = vmatprep.subr.mxu0 %v1292_v45 }
 0x1e3   :  { %v2129_v57 = vpop.eup %2128  ;;  %v668_v58 = vpop.f32.mrf.mxu1  ;;  %2040 = vmatpush3.msra.mxu0 %v1292_v45 }
 0x1e4   :  { %v839_v59 = vmul.f32 1.442695, %v788_v53  ;;  %1624 = vst.msk [vmem:[%s3563_s11 + $0xa0] sm:$0xff] %vm938_vm1, %v3040_v54  ;;  %v669_v61 = vadd.f32 %v668_v58, %v2613_v48  ;;  %1982 = vmatprep.mubr.msk.f32.mxu0 %vm938_vm1, %v911_v55  ;;  %1682 = vst.msk [vmem:[%s3567_s13 + $0x70] sm:$0xff] %vm938_vm1, %v911_v55  ;;  %v880_v62 = vmul.f32 %v2129_v57, %v752_v36  ;;  %v758_v55 = vld [vmem:[%s3565_s1 + $0xa8] sm:$0xff] }
 0x1e5   :  { %v672_v56 = vpop.f32.mrf.mxu1 }
 0x1e6   :  { %2136 = vpow2.f32 %v839_v59  ;;  %v789_v6 = vmul.f32 0.5, %v669_v61  ;;  %1656 = vst.msk [vmem:[%s3564_s12 + $0xa0] sm:$0xff] %vm938_vm1, %v669_v61  ;;  %v3062_v0 = vadd.f32 %v672_v56, %v2611_v47  ;;  %v912_v2 = vadd.f32 %v880_v62, %v2930_v3 }
 0x1e7   :  { %v2131_v1 = vpop.eup %2130  ;;  %v674_v5 = vpop.f32.mrf.mxu1 }
 0x1e8   :  { %v841_v7 = vmul.f32 1.442695, %v789_v6  ;;  %1625 = vst.msk [vmem:[%s3563_s11 + $0xa8] sm:$0xff] %vm938_vm1, %v3062_v0  ;;  %v675_v8 = vadd.f32 %v674_v5, %v2613_v48  ;;  %1983 = vmatmul.mubr.msk.f32.gmra.mxu0 %vm938_vm1, %v912_v2  ;;  %1683 = vst.msk [vmem:[%s3567_s13 + $0x78] sm:$0xff] %vm938_vm1, %v912_v2  ;;  %v881_v10 = vmul.f32 %v2131_v1, %v753_v63  ;;  %v759_v2 = vld [vmem:[%s3565_s1 + $0xb0] sm:$0xff] }
 0x1e9   :  { %v678_v3 = vpop.f32.mrf.mxu1 }
 0x1ea   :  { %2138 = vpow2.f32 %v841_v7  ;;  %v790_v60 = vmul.f32 0.5, %v675_v8  ;;  %1657 = vst.msk [vmem:[%s3564_s12 + $0xa8] sm:$0xff] %vm938_vm1, %v675_v8  ;;  %v3084_v13 = vadd.f32 %v678_v3, %v2611_v47  ;;  %v913_v14 = vadd.f32 %v881_v10, %v2952_v15 }
 0x1eb   :  { %v2133_v17 = vpop.eup %2132  ;;  %v680_v18 = vpop.f32.mrf.mxu1 }
 0x1ec   :  { %v843_v9 = vmul.f32 1.442695, %v790_v60  ;;  %1626 = vst.msk [vmem:[%s3563_s11 + $0xb0] sm:$0xff] %vm938_vm1, %v3084_v13  ;;  %v681_v19 = vadd.f32 %v680_v18, %v2613_v48  ;;  %1985 = vmatprep.mubr.msk.f32.mxu0 %vm938_vm1, %v913_v14  ;;  %1684 = vst.msk [vmem:[%s3567_s13 + $0x80] sm:$0xff] %vm938_vm1, %v913_v14  ;;  %v882_v20 = vmul.f32 %v2133_v17, %v754_v12  ;;  %v760_v14 = vld [vmem:[%s3565_s1 + $0xb8] sm:$0xff] }
 0x1ed   :  { %v684_v15 = vpop.f32.mrf.mxu1 }
 0x1ee   :  { %2140 = vpow2.f32 %v843_v9  ;;  %v791_v11 = vmul.f32 0.5, %v681_v19  ;;  %1658 = vst.msk [vmem:[%s3564_s12 + $0xb0] sm:$0xff] %vm938_vm1, %v681_v19  ;;  %v3106_v22 = vadd.f32 %v684_v15, %v2611_v47  ;;  %v914_v24 = vadd.f32 %v882_v20, %v2974_v25 }
 0x1ef   :  { %v2135_v27 = vpop.eup %2134  ;;  %v686_v28 = vpop.f32.mrf.mxu1 }
 0x1f0   :  { %v845_v30 = vmul.f32 1.442695, %v791_v11  ;;  %1627 = vst.msk [vmem:[%s3563_s11 + $0xb8] sm:$0xff] %vm938_vm1, %v3106_v22  ;;  %v687_v16 = vadd.f32 %v686_v28, %v2613_v48  ;;  %1986 = vmatmul.mubr.msk.f32.gmra.mxu0 %vm938_vm1, %v914_v24  ;;  %1685 = vst.msk [vmem:[%s3567_s13 + $0x88] sm:$0xff] %vm938_vm1, %v914_v24  ;;  %v883_v25 = vmul.f32 %v2135_v27, %v755_v21  ;;  %v761_v24 = vld [vmem:[%s3565_s1 + $0xc0] sm:$0xff] }
 0x1f1   :  { %v690_v31 = vpop.f32.mrf.mxu1 }
 0x1f2   :  { %2142 = vpow2.f32 %v845_v30  ;;  %v792_v33 = vmul.f32 0.5, %v687_v16  ;;  %1659 = vst.msk [vmem:[%s3564_s12 + $0xb8] sm:$0xff] %vm938_vm1, %v687_v16  ;;  %v3134_v37 = vadd.f32 %v690_v31, %v2611_v47  ;;  %v915_v38 = vadd.f32 %v883_v25, %v2996_v34 }
 0x1f3   :  { %v2137_v39 = vpop.eup %2136  ;;  %v692_v40 = vpop.f32.mrf.mxu1 }
 0x1f4   :  { %v847_v42 = vmul.f32 1.442695, %v792_v33  ;;  %1628 = vst.msk [vmem:[%s3563_s11 + $0xc0] sm:$0xff] %vm938_vm1, %v3134_v37  ;;  %v693_v35 = vadd.f32 %v692_v40, %v2613_v48  ;;  %1988 = vmatprep.mubr.msk.f32.mxu0 %vm938_vm1, %v915_v38  ;;  %1686 = vst.msk [vmem:[%s3567_s13 + $0x90] sm:$0xff] %vm938_vm1, %v915_v38  ;;  %v884_v34 = vmul.f32 %v2137_v39, %v756_v23 }
 0x1f5   :  { %v696_v26 = vpop.f32.mrf.mxu1 }
 0x1f6   :  { %2144 = vpow2.f32 %v847_v42  ;;  %v793_v49 = vmul.f32 0.5, %v693_v35  ;;  %1660 = vst.msk [vmem:[%s3564_s12 + $0xc0] sm:$0xff] %vm938_vm1, %v693_v35  ;;  %v3162_v50 = vadd.f32 %v696_v26, %v2611_v47  ;;  %v916_v4 = vadd.f32 %v884_v34, %v3018_v44 }
 0x1f7   :  { %v2139_v51 = vpop.eup %2138  ;;  %v698_v52 = vpop.f32.mrf.mxu1 }
 0x1f8   :  { %v849_v46 = vmul.f32 1.442695, %v793_v49  ;;  %1629 = vst.msk [vmem:[%s3563_s11 + $0xc8] sm:$0xff] %vm938_vm1, %v3162_v50  ;;  %v699_v36 = vadd.f32 %v698_v52, %v2613_v48  ;;  %1989 = vmatmul.mubr.msk.f32.gmra.mxu0 %vm938_vm1, %v916_v4  ;;  %1687 = vst.msk [vmem:[%s3567_s13 + $0x98] sm:$0xff] %vm938_vm1, %v916_v4  ;;  %v885_v44 = vmul.f32 %v2139_v51, %v757_v43 }
 0x1f9   :  { %v702_v53 = vpop.f32.mrf.mxu1 }
 0x1fa   :  { %2146 = vpow2.f32 %v849_v46  ;;  %v794_v57 = vmul.f32 0.5, %v699_v36  ;;  %1661 = vst.msk [vmem:[%s3564_s12 + $0xc8] sm:$0xff] %vm938_vm1, %v699_v36  ;;  %v3184_v58 = vadd.f32 %v702_v53, %v2611_v47  ;;  %v917_v59 = vadd.f32 %v885_v44, %v3040_v54 }
 0x1fb   :  { %v2141_v61 = vpop.eup %2140  ;;  %v704_v62 = vpop.f32.mrf.mxu1 }
 0x1fc   :  { %v851_v56 = vmul.f32 1.442695, %v794_v57  ;;  %1630 = vst.msk [vmem:[%s3563_s11 + $0xd0] sm:$0xff] %vm938_vm1, %v3184_v58  ;;  %v705_v63 = vadd.f32 %v704_v62, %v2613_v48  ;;  %1991 = vmatprep.mubr.msk.f32.mxu0 %vm938_vm1, %v917_v59  ;;  %1688 = vst.msk [vmem:[%s3567_s13 + $0xa0] sm:$0xff] %vm938_vm1, %v917_v59  ;;  %v886_v6 = vmul.f32 %v2141_v61, %v758_v55  ;;  %v765_v57 = vld [vmem:[%s3565_s1 + $0xe0] sm:$0xff]  ;;  %v766_v62 = vld [vmem:[%s3565_s1 + $0xe8] sm:$0xff] }
 0x1fd   :  { %v708_v54 = vpop.f32.mrf.mxu1 }
 0x1fe   :  { %2148 = vpow2.f32 %v851_v56  ;;  %v795_v1 = vmul.f32 0.5, %v705_v63  ;;  %1662 = vst.msk [vmem:[%s3564_s12 + $0xd0] sm:$0xff] %vm938_vm1, %v705_v63  ;;  %v3206_v5 = vadd.f32 %v708_v54, %v2611_v47  ;;  %v918_v7 = vadd.f32 %v886_v6, %v3062_v0  ;;  %v767_v54 = vld [vmem:[%s3565_s1 + $0xf0] sm:$0xff] }
 0x1ff   :  { %v2143_v8 = vpop.eup %2142  ;;  %v710_v10 = vpop.f32.mrf.mxu1 }
 0x200   :  { %v853_v3 = vmul.f32 1.442695, %v795_v1  ;;  %1631 = vst.msk [vmem:[%s3563_s11 + $0xd8] sm:$0xff] %vm938_vm1, %v3206_v5  ;;  %v711_v12 = vadd.f32 %v710_v10, %v2613_v48  ;;  %1992 = vmatmul.mubr.msk.f32.gmra.mxu0 %vm938_vm1, %v918_v7  ;;  %1689 = vst.msk [vmem:[%s3567_s13 + $0xa8] sm:$0xff] %vm938_vm1, %v918_v7  ;;  %v887_v60 = vmul.f32 %v2143_v8, %v759_v2  ;;  %v768_v7 = vld [vmem:[%s3565_s1 + $0xf8] sm:$0xff] }
 0x201   :  { %v714_v0 = vpop.f32.mrf.mxu1 }
 0x202   :  { %2150 = vpow2.f32 %v853_v3  ;;  %v796_v17 = vmul.f32 0.5, %v711_v12  ;;  %1663 = vst.msk [vmem:[%s3564_s12 + $0xd8] sm:$0xff] %vm938_vm1, %v711_v12  ;;  %v3228_v18 = vadd.f32 %v714_v0, %v2611_v47  ;;  %v919_v9 = vadd.f32 %v887_v60, %v3084_v13  ;;  %v3358_v60 = vld [vmem:[%s3568_s7] ss:$0 sm:$0xff] }
 0x203   :  { %v2145_v19 = vpop.eup %2144  ;;  %v716_v20 = vpop.f32.mrf.mxu1 }
 0x204   :  { %v855_v15 = vmul.f32 1.442695, %v796_v17  ;;  %1632 = vst.msk [vmem:[%s3563_s11 + $0xe0] sm:$0xff] %vm938_vm1, %v3228_v18  ;;  %v717_v21 = vadd.f32 %v716_v20, %v2613_v48  ;;  %1994 = vmatprep.mubr.msk.f32.mxu0 %vm938_vm1, %v919_v9  ;;  %1690 = vst.msk [vmem:[%s3567_s13 + $0xb0] sm:$0xff] %vm938_vm1, %v919_v9  ;;  %v888_v11 = vmul.f32 %v2145_v19, %v760_v14 }
 0x205   :  { %v720_v13 = vpop.f32.mrf.mxu1 }
 0x206   :  { %2152 = vpow2.f32 %v855_v15  ;;  %v797_v27 = vmul.f32 0.5, %v717_v21  ;;  %1664 = vst.msk [vmem:[%s3564_s12 + $0xe0] sm:$0xff] %vm938_vm1, %v717_v21  ;;  %v3250_v28 = vadd.f32 %v720_v13, %v2611_v47  ;;  %v920_v29 = vadd.f32 %v888_v11, %v3106_v22 }
 0x207   :  { %v2147_v30 = vpop.eup %2146  ;;  %v722_v16 = vpop.f32.mrf.mxu1 }
 0x208   :  { %v857_v25 = vmul.f32 1.442695, %v797_v27  ;;  %1633 = vst.msk [vmem:[%s3563_s11 + $0xe8] sm:$0xff] %vm938_vm1, %v3250_v28  ;;  %v723_v31 = vadd.f32 %v722_v16, %v2613_v48  ;;  %1995 = vmatmul.mubr.msk.f32.gmra.mxu0 %vm938_vm1, %v920_v29  ;;  %1691 = vst.msk [vmem:[%s3567_s13 + $0xb8] sm:$0xff] %vm938_vm1, %v920_v29  ;;  %v889_v23 = vmul.f32 %v2147_v30, %v761_v24 }
 0x209   :  { %v726_v22 = vpop.f32.mrf.mxu1 }
 0x20a   :  { %2154 = vpow2.f32 %v857_v25  ;;  %v798_v33 = vmul.f32 0.5, %v723_v31  ;;  %1665 = vst.msk [vmem:[%s3564_s12 + $0xe8] sm:$0xff] %vm938_vm1, %v723_v31  ;;  %v727_v38 = vadd.f32 %v726_v22, %v2611_v47  ;;  %v921_v39 = vadd.f32 %v889_v23, %v3134_v37  ;;  %v763_v37 = vld [vmem:[%s3565_s1 + $0xd0] sm:$0xff] }
 0x20b   :  { %v2149_v40 = vpop.eup %2148  ;;  %v728_v41 = vpop.f32.mrf.mxu1 }
 0x20c   :  { %v859_v42 = vmul.f32 1.442695, %v798_v33  ;;  %1634 = vst.msk [vmem:[%s3563_s11 + $0xf0] sm:$0xff] %vm938_vm1, %v727_v38  ;;  %v729_v35 = vadd.f32 %v728_v41, %v2613_v48  ;;  %1997 = vmatprep.mubr.msk.f32.mxu0 %vm938_vm1, %v921_v39  ;;  %1692 = vst.msk [vmem:[%s3567_s13 + $0xc0] sm:$0xff] %vm938_vm1, %v921_v39  ;;  %v890_v34 = vmul.f32 %v2149_v40, %v762_v32 }
 0x20d   :  { %v732_v26 = vpop.f32.mrf.mxu1 }
 0x20e   :  { %2156 = vpow2.f32 %v859_v42  ;;  %v799_v43 = vmul.f32 0.5, %v729_v35  ;;  %1666 = vst.msk [vmem:[%s3564_s12 + $0xf0] sm:$0xff] %vm938_vm1, %v729_v35  ;;  %v733_v45 = vadd.f32 %v732_v26, %v2611_v47  ;;  %v922_v49 = vadd.f32 %v890_v34, %v3162_v50  ;;  %v764_v50 = vld [vmem:[%s3565_s1 + $0xd8] sm:$0xff] }
 0x20f   :  { %v2151_v4 = vpop.eup %2150  ;;  %v734_v51 = vpop.f32.mrf.mxu1 }
 0x210   :  { %v861_v52 = vmul.f32 1.442695, %v799_v43  ;;  %1635 = vst.msk [vmem:[%s3563_s11 + $0xf8] sm:$0xff] %vm938_vm1, %v733_v45  ;;  %v735_v46 = vadd.f32 %v734_v51, %v2613_v48  ;;  %1998 = vmatmul.mubr.msk.f32.gmra.mxu0 %vm938_vm1, %v922_v49  ;;  %1693 = vst.msk [vmem:[%s3567_s13 + $0xc8] sm:$0xff] %vm938_vm1, %v922_v49  ;;  %v891_v47 = vmul.f32 %v2151_v4, %v763_v37 }
 0x212   :  { %2158 = vpow2.f32 %v861_v52  ;;  %v800_v36 = vmul.f32 0.5, %v735_v46  ;;  %1667 = vst.msk [vmem:[%s3564_s12 + $0xf8] sm:$0xff] %vm938_vm1, %v735_v46  ;;  %v923_v48 = vadd.f32 %v891_v47, %v3184_v58 }
 0x213   :  { %v2153_v44 = vpop.eup %2152 }
 0x214   :  { %v863_v53 = vmul.f32 1.442695, %v800_v36  ;;  %2000 = vmatprep.mubr.msk.f32.mxu0 %vm938_vm1, %v923_v48  ;;  %1694 = vst.msk [vmem:[%s3567_s13 + $0xd0] sm:$0xff] %vm938_vm1, %v923_v48  ;;  %v892_v55 = vmul.f32 %v2153_v44, %v764_v50 }
 0x216   :  { %2160 = vpow2.f32 %v863_v53  ;;  %v924_v59 = vadd.f32 %v892_v55, %v3206_v5 }
 0x217   :  { %v2155_v61 = vpop.eup %2154 }
 0x218   :  { %2001 = vmatmul.mubr.msk.f32.gmra.mxu0 %vm938_vm1, %v924_v59  ;;  %1695 = vst.msk [vmem:[%s3567_s13 + $0xd8] sm:$0xff] %vm938_vm1, %v924_v59  ;;  %v893_v58 = vmul.f32 %v2155_v61, %v765_v57 }
 0x21a   :  { %v925_v56 = vadd.f32 %v893_v58, %v3228_v18 }
 0x21b   :  { %v2157_v63 = vpop.eup %2156 }
 0x21c   :  { %2003 = vmatprep.mubr.msk.f32.mxu0 %vm938_vm1, %v925_v56  ;;  %1696 = vst.msk [vmem:[%s3567_s13 + $0xe0] sm:$0xff] %vm938_vm1, %v925_v56  ;;  %v894_v6 = vmul.f32 %v2157_v63, %v766_v62 }
 0x21e   :  { %v926_v2 = vadd.f32 %v894_v6, %v3250_v28 }
 0x21f   :  { %v2159_v1 = vpop.eup %2158 }
 0x220   :  { %2004 = vmatmul.mubr.msk.f32.gmra.mxu0 %vm938_vm1, %v926_v2  ;;  %1697 = vst.msk [vmem:[%s3567_s13 + $0xe8] sm:$0xff] %vm938_vm1, %v926_v2  ;;  %v895_v5 = vmul.f32 %v2159_v1, %v767_v54 }
 0x222   :  { %v927_v8 = vadd.f32 %v895_v5, %v727_v38 }
 0x223   :  { %v2161_v10 = vpop.eup %2160 }
 0x224   :  { %2006 = vmatprep.mubr.msk.f32.mxu0 %vm938_vm1, %v927_v8  ;;  %1698 = vst.msk [vmem:[%s3567_s13 + $0xf0] sm:$0xff] %vm938_vm1, %v927_v8  ;;  %v896_v3 = vmul.f32 %v2161_v10, %v768_v7 }
 0x226   :  { %v928_v12 = vadd.f32 %v896_v3, %v733_v45 }
 0x228   :  { %2007 = vmatmul.mubr.msk.f32.gmra.mxu0 %vm938_vm1, %v928_v12  ;;  %1699 = vst.msk [vmem:[%s3567_s13 + $0xf8] sm:$0xff] %vm938_vm1, %v928_v12 }
 0x270   :  { %v1963_v0 = vpop.f32.mrf.mxu0 }
 0x271   :  { %v1107_v14 = vadd.f32 %v1963_v0, %v3358_v60 }
 0x272   :  { %v1101_v17 = vpop.f32.mrf.mxu0 }
 0x273   :  { %v1102_v18 = vadd.f32 %v3358_v60, %v1101_v17  ;;  %v1261_v19 = vmax.f32 %v1107_v14, 0.0 }
 0x275   :  { %v1260_v9 = vmax.f32 %v1102_v18, 0.0 }
 0x277   :  { %2041 = vmatprep.mubr.f32.mxu0 %v1260_v9 }
 0x278   :  { %v1966_v20 = vpop.f32.mrf.mxu0  ;;  %2042 = vmatmul.mubr.f32.vlgmr.msra.gmra.mxu0 %v1261_v19 }
 0x279   :  { %v1117_v15 = vadd.f32 %v1966_v20, %v3358_v60 }
 0x27a   :  { %v1111_v21 = vpop.f32.mrf.mxu0 }
 0x27b   :  { %v1112_v11 = vadd.f32 %v3358_v60, %v1111_v21  ;;  %v1263_v24 = vmax.f32 %v1117_v15, 0.0 }
 0x27d   :  { %v1262_v13 = vmax.f32 %v1112_v11, 0.0 }
 0x27f   :  { %2044 = vmatprep.mubr.f32.mxu0 %v1262_v13 }
 0x280   :  { %v1969_v27 = vpop.f32.mrf.mxu0  ;;  %2045 = vmatmul.mubr.f32.gmra.mxu0 %v1263_v24 }
 0x281   :  { %v1127_v28 = vadd.f32 %v1969_v27, %v3358_v60 }
 0x282   :  { %v1121_v29 = vpop.f32.mrf.mxu0 }
 0x283   :  { %v1122_v30 = vadd.f32 %v3358_v60, %v1121_v29  ;;  %v1265_v25 = vmax.f32 %v1127_v28, 0.0 }
 0x285   :  { %v1264_v16 = vmax.f32 %v1122_v30, 0.0 }
 0x287   :  { %2047 = vmatprep.mubr.f32.mxu0 %v1264_v16 }
 0x288   :  { %v1972_v31 = vpop.f32.mrf.mxu0  ;;  %2048 = vmatmul.mubr.f32.gmra.mxu0 %v1265_v25 }
 0x289   :  { %v1137_v23 = vadd.f32 %v1972_v31, %v3358_v60 }
 0x28a   :  { %v1131_v22 = vpop.f32.mrf.mxu0 }
 0x28b   :  { %v1132_v32 = vadd.f32 %v3358_v60, %v1131_v22  ;;  %v1267_v38 = vmax.f32 %v1137_v23, 0.0 }
 0x28d   :  { %v1266_v33 = vmax.f32 %v1132_v32, 0.0 }
 0x28f   :  { %2050 = vmatprep.mubr.f32.mxu0 %v1266_v33 }
 0x290   :  { %v1975_v39 = vpop.f32.mrf.mxu0  ;;  %2051 = vmatmul.mubr.f32.gmra.mxu0 %v1267_v38 }
 0x291   :  { %v1147_v40 = vadd.f32 %v1975_v39, %v3358_v60 }
 0x292   :  { %v1141_v41 = vpop.f32.mrf.mxu0 }
 0x293   :  { %v1142_v42 = vadd.f32 %v3358_v60, %v1141_v41  ;;  %v1269_v34 = vmax.f32 %v1147_v40, 0.0 }
 0x295   :  { %v1268_v35 = vmax.f32 %v1142_v42, 0.0 }
 0x297   :  { %2053 = vmatprep.mubr.f32.mxu0 %v1268_v35 }
 0x298   :  { %v1978_v26 = vpop.f32.mrf.mxu0  ;;  %2054 = vmatmul.mubr.f32.gmra.mxu0 %v1269_v34 }
 0x299   :  { %v1157_v37 = vadd.f32 %v1978_v26, %v3358_v60 }
 0x29a   :  { %v1151_v43 = vpop.f32.mrf.mxu0 }
 0x29b   :  { %v1152_v45 = vadd.f32 %v3358_v60, %v1151_v43  ;;  %v1271_v4 = vmax.f32 %v1157_v37, 0.0 }
 0x29d   :  { %v1270_v49 = vmax.f32 %v1152_v45, 0.0  ;;  %v3395_v45 = vld [vmem:[%s3569_s9] ss:$0 sm:$0xff] }
 0x29f   :  { %2056 = vmatprep.mubr.f32.mxu0 %v1270_v49 }
 0x2a0   :  { %v1981_v51 = vpop.f32.mrf.mxu0  ;;  %2057 = vmatmul.mubr.f32.gmra.mxu0 %v1271_v4 }
 0x2a1   :  { %v1167_v52 = vadd.f32 %v1981_v51, %v3358_v60 }
 0x2a2   :  { %v1161_v46 = vpop.f32.mrf.mxu0 }
 0x2a3   :  { %v1162_v47 = vadd.f32 %v3358_v60, %v1161_v46  ;;  %v1273_v36 = vmax.f32 %v1167_v52, 0.0 }
 0x2a5   :  { %v1272_v50 = vmax.f32 %v1162_v47, 0.0 }
 0x2a7   :  { %2059 = vmatprep.mubr.f32.mxu0 %v1272_v50 }
 0x2a8   :  { %v1984_v48 = vpop.f32.mrf.mxu0  ;;  %2060 = vmatmul.mubr.f32.gmra.mxu0 %v1273_v36 }
 0x2a9   :  { %v1177_v44 = vadd.f32 %v1984_v48, %v3358_v60 }
 0x2aa   :  { %v1171_v53 = vpop.f32.mrf.mxu0 }
 0x2ab   :  { %v1172_v55 = vadd.f32 %v3358_v60, %v1171_v53  ;;  %v1275_v59 = vmax.f32 %v1177_v44, 0.0 }
 0x2ad   :  { %v1274_v57 = vmax.f32 %v1172_v55, 0.0 }
 0x2af   :  { %2062 = vmatprep.mubr.f32.mxu0 %v1274_v57 }
 0x2b0   :  { %v1987_v61 = vpop.f32.mrf.mxu0  ;;  %2063 = vmatmul.mubr.f32.gmra.mxu0 %v1275_v59 }
 0x2b1   :  { %v1187_v58 = vadd.f32 %v1987_v61, %v3358_v60 }
 0x2b2   :  { %v1181_v62 = vpop.f32.mrf.mxu0 }
 0x2b3   :  { %v1182_v56 = vadd.f32 %v3358_v60, %v1181_v62  ;;  %v1277_v6 = vmax.f32 %v1187_v58, 0.0 }
 0x2b5   :  { %v1276_v63 = vmax.f32 %v1182_v56, 0.0 }
 0x2b7   :  { %2065 = vmatprep.mubr.f32.mxu0 %v1276_v63 }
 0x2b8   :  { %v1990_v54 = vpop.f32.mrf.mxu0  ;;  %2066 = vmatmul.mubr.f32.gmra.mxu0 %v1277_v6 }
 0x2b9   :  { %v1197_v2 = vadd.f32 %v1990_v54, %v3358_v60 }
 0x2ba   :  { %v1191_v1 = vpop.f32.mrf.mxu0 }
 0x2bb   :  { %v1192_v5 = vadd.f32 %v3358_v60, %v1191_v1  ;;  %v1279_v8 = vmax.f32 %v1197_v2, 0.0 }
 0x2bd   :  { %v1278_v7 = vmax.f32 %v1192_v5, 0.0 }
 0x2bf   :  { %2068 = vmatprep.mubr.f32.mxu0 %v1278_v7 }
 0x2c0   :  { %v1993_v10 = vpop.f32.mrf.mxu0  ;;  %2069 = vmatmul.mubr.f32.gmra.mxu0 %v1279_v8 }
 0x2c1   :  { %v1207_v3 = vadd.f32 %v1993_v10, %v3358_v60 }
 0x2c2   :  { %v1201_v12 = vpop.f32.mrf.mxu0 }
 0x2c3   :  { %v1202_v0 = vadd.f32 %v3358_v60, %v1201_v12  ;;  %v1281_v17 = vmax.f32 %v1207_v3, 0.0 }
 0x2c5   :  { %v1280_v14 = vmax.f32 %v1202_v0, 0.0 }
 0x2c7   :  { %2071 = vmatprep.mubr.f32.mxu0 %v1280_v14 }
 0x2c8   :  { %v1996_v18 = vpop.f32.mrf.mxu0  ;;  %2072 = vmatmul.mubr.f32.gmra.mxu0 %v1281_v17 }
 0x2c9   :  { %v1217_v9 = vadd.f32 %v1996_v18, %v3358_v60 }
 0x2ca   :  { %v1211_v19 = vpop.f32.mrf.mxu0 }
 0x2cb   :  { %v1212_v20 = vadd.f32 %v3358_v60, %v1211_v19  ;;  %v1283_v21 = vmax.f32 %v1217_v9, 0.0 }
 0x2cd   :  { %v1282_v15 = vmax.f32 %v1212_v20, 0.0 }
 0x2cf   :  { %2074 = vmatprep.mubr.f32.mxu0 %v1282_v15 }
 0x2d0   :  { %v1999_v11 = vpop.f32.mrf.mxu0  ;;  %2075 = vmatmul.mubr.f32.gmra.mxu0 %v1283_v21 }
 0x2d1   :  { %v1227_v13 = vadd.f32 %v1999_v11, %v3358_v60 }
 0x2d2   :  { %v1221_v24 = vpop.f32.mrf.mxu0 }
 0x2d3   :  { %v1222_v27 = vadd.f32 %v3358_v60, %v1221_v24  ;;  %v1285_v29 = vmax.f32 %v1227_v13, 0.0 }
 0x2d5   :  { %v1284_v28 = vmax.f32 %v1222_v27, 0.0 }
 0x2d7   :  { %2077 = vmatprep.mubr.f32.mxu0 %v1284_v28 }
 0x2d8   :  { %v2002_v30 = vpop.f32.mrf.mxu0  ;;  %2078 = vmatmul.mubr.f32.gmra.mxu0 %v1285_v29 }
 0x2d9   :  { %v1237_v16 = vadd.f32 %v2002_v30, %v3358_v60 }
 0x2da   :  { %v1231_v25 = vpop.f32.mrf.mxu0 }
 0x2db   :  { %v1232_v31 = vadd.f32 %v3358_v60, %v1231_v25  ;;  %v1287_v22 = vmax.f32 %v1237_v16, 0.0 }
 0x2dd   :  { %v1286_v23 = vmax.f32 %v1232_v31, 0.0 }
 0x2df   :  { %2080 = vmatprep.mubr.f32.mxu0 %v1286_v23 }
 0x2e0   :  { %v2005_v32 = vpop.f32.mrf.mxu0  ;;  %2081 = vmatmul.mubr.f32.gmra.mxu0 %v1287_v22 }
 0x2e1   :  { %v1247_v33 = vadd.f32 %v2005_v32, %v3358_v60 }
 0x2e2   :  { %v1241_v38 = vpop.f32.mrf.mxu0 }
 0x2e3   :  { %v1242_v39 = vadd.f32 %v3358_v60, %v1241_v38  ;;  %v1289_v41 = vmax.f32 %v1247_v33, 0.0 }
 0x2e5   :  { %v1288_v40 = vmax.f32 %v1242_v39, 0.0 }
 0x2e7   :  { %2083 = vmatprep.mubr.f32.mxu0 %v1288_v40 }
 0x2e8   :  { %v2008_v42 = vpop.f32.mrf.mxu0  ;;  %2084 = vmatmul.mubr.f32.gmra.mxu0 %v1289_v41 }
 0x2e9   :  { %v1257_v35 = vadd.f32 %v2008_v42, %v3358_v60 }
 0x2ea   :  { %v1251_v34 = vpop.f32.mrf.mxu0 }
 0x2eb   :  { %v1252_v26 = vadd.f32 %v3358_v60, %v1251_v34  ;;  %v1291_v43 = vmax.f32 %v1257_v35, 0.0 }
 0x2ed   :  { %v1290_v37 = vmax.f32 %v1252_v26, 0.0 }
 0x2ef   :  { %2086 = vmatprep.mubr.f32.mxu0 %v1290_v37 }
 0x2f0   :  { %2087 = vmatmul.mubr.f32.gmra.mxu0 %v1291_v43 }
 0x338   :  { %v2043_v49 = vpop.f32.mrf.mxu0 }
 0x339   :  { %v1387_v4 = vadd.f32 %v2043_v49, %v3395_v45 }
 0x33a   :  { %v1381_v51 = vpop.f32.mrf.mxu0 }
 0x33b   :  { %2162 = vtanh.f32 %v1387_v4  ;;  %v1382_v52 = vadd.f32 %v3395_v45, %v1381_v51 }
 0x33d   :  { %2164 = vtanh.f32 %v1382_v52 }
 0x340   :  { %v2046_v46 = vpop.f32.mrf.mxu0 }
 0x341   :  { %v1397_v60 = vadd.f32 %v2046_v46, %v3395_v45 }
 0x342   :  { %v1391_v47 = vpop.f32.mrf.mxu0 }
 0x343   :  { %2166 = vtanh.f32 %v1397_v60  ;;  %v1392_v50 = vadd.f32 %v3395_v45, %v1391_v47 }
 0x345   :  { %2168 = vtanh.f32 %v1392_v50 }
 0x348   :  { %v2163_v36 = vpop.eup %2162  ;;  %v2049_v48 = vpop.f32.mrf.mxu0 }
 0x349   :  { %1573 = vst.msk [vmem:[%s3570_s10 + $0x8] sm:$0xff] %vm82_vm0, %v2163_v36  ;;  %v1407_v44 = vadd.f32 %v2049_v48, %v3395_v45 }
 0x34a   :  { %v2165_v53 = vpop.eup %2164  ;;  %v1401_v55 = vpop.f32.mrf.mxu0 }
 0x34b   :  { %1572 = vst.msk [vmem:[%s3570_s10] sm:$0xff] %vm82_vm0, %v2165_v53  ;;  %2170 = vtanh.f32 %v1407_v44  ;;  %v1402_v57 = vadd.f32 %v3395_v45, %v1401_v55 }
 0x34d   :  { %2172 = vtanh.f32 %v1402_v57 }
 0x350   :  { %v2167_v59 = vpop.eup %2166  ;;  %v2052_v61 = vpop.f32.mrf.mxu0 }
 0x351   :  { %1575 = vst.msk [vmem:[%s3570_s10 + $0x18] sm:$0xff] %vm82_vm0, %v2167_v59  ;;  %v1417_v58 = vadd.f32 %v2052_v61, %v3395_v45 }
 0x352   :  { %v2169_v62 = vpop.eup %2168  ;;  %v1411_v56 = vpop.f32.mrf.mxu0 }
 0x353   :  { %1574 = vst.msk [vmem:[%s3570_s10 + $0x10] sm:$0xff] %vm82_vm0, %v2169_v62  ;;  %2174 = vtanh.f32 %v1417_v58  ;;  %v1412_v63 = vadd.f32 %v3395_v45, %v1411_v56 }
 0x355   :  { %2176 = vtanh.f32 %v1412_v63 }
 0x358   :  { %v2171_v6 = vpop.eup %2170  ;;  %v2055_v54 = vpop.f32.mrf.mxu0 }
 0x359   :  { %1577 = vst.msk [vmem:[%s3570_s10 + $0x28] sm:$0xff] %vm82_vm0, %v2171_v6  ;;  %v1427_v2 = vadd.f32 %v2055_v54, %v3395_v45 }
 0x35a   :  { %v2173_v1 = vpop.eup %2172  ;;  %v1421_v5 = vpop.f32.mrf.mxu0 }
 0x35b   :  { %1576 = vst.msk [vmem:[%s3570_s10 + $0x20] sm:$0xff] %vm82_vm0, %v2173_v1  ;;  %2178 = vtanh.f32 %v1427_v2  ;;  %v1422_v7 = vadd.f32 %v3395_v45, %v1421_v5 }
 0x35d   :  { %2180 = vtanh.f32 %v1422_v7 }
 0x360   :  { %v2175_v8 = vpop.eup %2174  ;;  %v2058_v10 = vpop.f32.mrf.mxu0 }
 0x361   :  { %1579 = vst.msk [vmem:[%s3570_s10 + $0x38] sm:$0xff] %vm82_vm0, %v2175_v8  ;;  %v1437_v3 = vadd.f32 %v2058_v10, %v3395_v45 }
 0x362   :  { %v2177_v12 = vpop.eup %2176  ;;  %v1431_v0 = vpop.f32.mrf.mxu0 }
 0x363   :  { %1578 = vst.msk [vmem:[%s3570_s10 + $0x30] sm:$0xff] %vm82_vm0, %v2177_v12  ;;  %2182 = vtanh.f32 %v1437_v3  ;;  %v1432_v14 = vadd.f32 %v3395_v45, %v1431_v0 }
 0x365   :  { %2184 = vtanh.f32 %v1432_v14 }
 0x368   :  { %v2179_v17 = vpop.eup %2178  ;;  %v2061_v18 = vpop.f32.mrf.mxu0 }
 0x369   :  { %1581 = vst.msk [vmem:[%s3570_s10 + $0x48] sm:$0xff] %vm82_vm0, %v2179_v17  ;;  %v1447_v9 = vadd.f32 %v2061_v18, %v3395_v45 }
 0x36a   :  { %v2181_v19 = vpop.eup %2180  ;;  %v1441_v20 = vpop.f32.mrf.mxu0 }
 0x36b   :  { %1580 = vst.msk [vmem:[%s3570_s10 + $0x40] sm:$0xff] %vm82_vm0, %v2181_v19  ;;  %2186 = vtanh.f32 %v1447_v9  ;;  %v1442_v15 = vadd.f32 %v3395_v45, %v1441_v20 }
 0x36d   :  { %2188 = vtanh.f32 %v1442_v15 }
 0x370   :  { %v2183_v21 = vpop.eup %2182  ;;  %v2064_v11 = vpop.f32.mrf.mxu0 }
 0x371   :  { %1583 = vst.msk [vmem:[%s3570_s10 + $0x58] sm:$0xff] %vm82_vm0, %v2183_v21  ;;  %v1457_v13 = vadd.f32 %v2064_v11, %v3395_v45 }
 0x372   :  { %v2185_v24 = vpop.eup %2184  ;;  %v1451_v27 = vpop.f32.mrf.mxu0 }
 0x373   :  { %1582 = vst.msk [vmem:[%s3570_s10 + $0x50] sm:$0xff] %vm82_vm0, %v2185_v24  ;;  %2190 = vtanh.f32 %v1457_v13  ;;  %v1452_v28 = vadd.f32 %v3395_v45, %v1451_v27 }
 0x375   :  { %2192 = vtanh.f32 %v1452_v28 }
 0x378   :  { %v2187_v29 = vpop.eup %2186  ;;  %v2067_v30 = vpop.f32.mrf.mxu0 }
 0x379   :  { %1585 = vst.msk [vmem:[%s3570_s10 + $0x68] sm:$0xff] %vm82_vm0, %v2187_v29  ;;  %v1467_v16 = vadd.f32 %v2067_v30, %v3395_v45 }
 0x37a   :  { %v2189_v25 = vpop.eup %2188  ;;  %v1461_v31 = vpop.f32.mrf.mxu0 }
 0x37b   :  { %1584 = vst.msk [vmem:[%s3570_s10 + $0x60] sm:$0xff] %vm82_vm0, %v2189_v25  ;;  %2194 = vtanh.f32 %v1467_v16  ;;  %v1462_v23 = vadd.f32 %v3395_v45, %v1461_v31 }
 0x37d   :  { %2196 = vtanh.f32 %v1462_v23 }
 0x380   :  { %v2191_v22 = vpop.eup %2190  ;;  %v2070_v32 = vpop.f32.mrf.mxu0 }
 0x381   :  { %1587 = vst.msk [vmem:[%s3570_s10 + $0x78] sm:$0xff] %vm82_vm0, %v2191_v22  ;;  %v1477_v33 = vadd.f32 %v2070_v32, %v3395_v45 }
 0x382   :  { %v2193_v38 = vpop.eup %2192  ;;  %v1471_v39 = vpop.f32.mrf.mxu0 }
 0x383   :  { %1586 = vst.msk [vmem:[%s3570_s10 + $0x70] sm:$0xff] %vm82_vm0, %v2193_v38  ;;  %2198 = vtanh.f32 %v1477_v33  ;;  %v1472_v40 = vadd.f32 %v3395_v45, %v1471_v39 }
 0x385   :  { %2200 = vtanh.f32 %v1472_v40 }
 0x388   :  { %v2195_v41 = vpop.eup %2194  ;;  %v2073_v42 = vpop.f32.mrf.mxu0 }
 0x389   :  { %1589 = vst.msk [vmem:[%s3570_s10 + $0x88] sm:$0xff] %vm82_vm0, %v2195_v41  ;;  %v1487_v35 = vadd.f32 %v2073_v42, %v3395_v45 }
 0x38a   :  { %v2197_v34 = vpop.eup %2196  ;;  %v1481_v26 = vpop.f32.mrf.mxu0 }
 0x38b   :  { %1588 = vst.msk [vmem:[%s3570_s10 + $0x80] sm:$0xff] %vm82_vm0, %v2197_v34  ;;  %2202 = vtanh.f32 %v1487_v35  ;;  %v1482_v37 = vadd.f32 %v3395_v45, %v1481_v26 }
 0x38d   :  { %2204 = vtanh.f32 %v1482_v37 }
 0x390   :  { %v2199_v43 = vpop.eup %2198  ;;  %v2076_v49 = vpop.f32.mrf.mxu0 }
 0x391   :  { %1591 = vst.msk [vmem:[%s3570_s10 + $0x98] sm:$0xff] %vm82_vm0, %v2199_v43  ;;  %v1497_v4 = vadd.f32 %v2076_v49, %v3395_v45 }
 0x392   :  { %v2201_v51 = vpop.eup %2200  ;;  %v1491_v52 = vpop.f32.mrf.mxu0 }
 0x393   :  { %1590 = vst.msk [vmem:[%s3570_s10 + $0x90] sm:$0xff] %vm82_vm0, %v2201_v51  ;;  %2206 = vtanh.f32 %v1497_v4  ;;  %v1492_v46 = vadd.f32 %v3395_v45, %v1491_v52 }
 0x395   :  { %2208 = vtanh.f32 %v1492_v46 }
 0x398   :  { %v2203_v60 = vpop.eup %2202  ;;  %v2079_v47 = vpop.f32.mrf.mxu0 }
 0x399   :  { %1593 = vst.msk [vmem:[%s3570_s10 + $0xa8] sm:$0xff] %vm82_vm0, %v2203_v60  ;;  %v1507_v50 = vadd.f32 %v2079_v47, %v3395_v45 }
 0x39a   :  { %v2205_v36 = vpop.eup %2204  ;;  %v1501_v48 = vpop.f32.mrf.mxu0 }
 0x39b   :  { %1592 = vst.msk [vmem:[%s3570_s10 + $0xa0] sm:$0xff] %vm82_vm0, %v2205_v36  ;;  %2210 = vtanh.f32 %v1507_v50  ;;  %v1502_v44 = vadd.f32 %v3395_v45, %v1501_v48 }
 0x39d   :  { %2212 = vtanh.f32 %v1502_v44 }
 0x3a0   :  { %v2207_v53 = vpop.eup %2206  ;;  %v2082_v55 = vpop.f32.mrf.mxu0 }
 0x3a1   :  { %1595 = vst.msk [vmem:[%s3570_s10 + $0xb8] sm:$0xff] %vm82_vm0, %v2207_v53  ;;  %v1517_v57 = vadd.f32 %v2082_v55, %v3395_v45 }
 0x3a2   :  { %v2209_v59 = vpop.eup %2208  ;;  %v1511_v61 = vpop.f32.mrf.mxu0 }
 0x3a3   :  { %1594 = vst.msk [vmem:[%s3570_s10 + $0xb0] sm:$0xff] %vm82_vm0, %v2209_v59  ;;  %2214 = vtanh.f32 %v1517_v57  ;;  %v1512_v58 = vadd.f32 %v3395_v45, %v1511_v61 }
 0x3a5   :  { %2216 = vtanh.f32 %v1512_v58 }
 0x3a8   :  { %v2211_v62 = vpop.eup %2210  ;;  %v2085_v56 = vpop.f32.mrf.mxu0 }
 0x3a9   :  { %1597 = vst.msk [vmem:[%s3570_s10 + $0xc8] sm:$0xff] %vm82_vm0, %v2211_v62  ;;  %v1527_v63 = vadd.f32 %v2085_v56, %v3395_v45 }
 0x3aa   :  { %v2213_v6 = vpop.eup %2212  ;;  %v1521_v54 = vpop.f32.mrf.mxu0 }
 0x3ab   :  { %1596 = vst.msk [vmem:[%s3570_s10 + $0xc0] sm:$0xff] %vm82_vm0, %v2213_v6  ;;  %2218 = vtanh.f32 %v1527_v63  ;;  %v1522_v2 = vadd.f32 %v3395_v45, %v1521_v54 }
 0x3ad   :  { %2220 = vtanh.f32 %v1522_v2 }
 0x3b0   :  { %v2215_v1 = vpop.eup %2214  ;;  %v2088_v5 = vpop.f32.mrf.mxu0 }
 0x3b1   :  { %1599 = vst.msk [vmem:[%s3570_s10 + $0xd8] sm:$0xff] %vm82_vm0, %v2215_v1  ;;  %v1537_v7 = vadd.f32 %v2088_v5, %v3395_v45 }
 0x3b2   :  { %v2217_v8 = vpop.eup %2216  ;;  %v1531_v10 = vpop.f32.mrf.mxu0 }
 0x3b3   :  { %1598 = vst.msk [vmem:[%s3570_s10 + $0xd0] sm:$0xff] %vm82_vm0, %v2217_v8  ;;  %2222 = vtanh.f32 %v1537_v7  ;;  %v1532_v3 = vadd.f32 %v3395_v45, %v1531_v10 }
 0x3b5   :  { %2224 = vtanh.f32 %v1532_v3 }
 0x3b8   :  { %v2219_v12 = vpop.eup %2218 }
 0x3b9   :  { %1601 = vst.msk [vmem:[%s3570_s10 + $0xe8] sm:$0xff] %vm82_vm0, %v2219_v12 }
 0x3ba   :  { %v2221_v0 = vpop.eup %2220 }
 0x3bb   :  { %1600 = vst.msk [vmem:[%s3570_s10 + $0xe0] sm:$0xff] %vm82_vm0, %v2221_v0 }
 0x3c0   :  { %v2223_v14 = vpop.eup %2222 }
 0x3c1   :  { %1603 = vst.msk [vmem:[%s3570_s10 + $0xf8] sm:$0xff] %vm82_vm0, %v2223_v14 }
 0x3c2   :  { %v2225_v45 = vpop.eup %2224 }
 0x3c3   :  { %1602 = vst.msk [vmem:[%s3570_s10 + $0xf0] sm:$0xff] %vm82_vm0, %v2225_v45 }

</bundles_post_ra>
